<compile_context>
chip_gen: v7x
topology: tpu7x:2x2x1
jax: 0.10.0
libtpu: 0.0.40
codegen_flags: <defaults>
</compile_context>

<pallas_src>
import jax
import jax.numpy as jnp
from jax.experimental import pallas as pl
from jax.experimental.pallas import tpu as pltpu

BN_EPS = 1e-5

# Tile caps: feats tile = ROW_BLOCK_CAP * T_BLOCK_CAP * C * 2B = 4 MiB at C=512
# (double-buffered -> 8 MiB), safe for v7x's 32 MiB scoped / 64 MiB physical VMEM.
ROW_BLOCK_CAP = 128
T_BLOCK_CAP = 32


def _round_up(x, m):
    return (x + m - 1) // m * m


def _projector_kernel(
    feats_ref,                 # (row_block, t_block, C)  bf16
    w1_ref, w2_ref, w3_ref,    # (C, D), (D, D), (D, D)   bf16 (BN + 1/T folded in)
    b1_ref, b2_ref,            # (1, D) f32 folded BN biases
    out_ref,                   # (row_block, D) f32
    acc_ref,                   # (row_block, C) f32 scratch: running time-sum
):
    t = pl.program_id(1)

    @pl.when(t == 0)
    def _():
        acc_ref[...] = jnp.zeros_like(acc_ref)

    # Time reduction (sublane axis), accumulated in f32. The 1/T of the mean is
    # folded into w1, so this is a plain sum.
    acc_ref[...] += jnp.sum(feats_ref[...].astype(jnp.float32), axis=1)

    @pl.when(t == pl.num_programs(1) - 1)
    def _():
        pooled = acc_ref[...]                                   # (row_block, C) f32

        # Layer 0: Linear(512->D) + folded BN + ReLU
        h = jnp.dot(pooled.astype(jnp.bfloat16), w1_ref[...],
                    preferred_element_type=jnp.float32)
        h = jnp.maximum(h + b1_ref[...], 0.0)

        # Layer 1: Linear(D->D) + folded BN + ReLU
        h = jnp.dot(h.astype(jnp.bfloat16), w2_ref[...],
                    preferred_element_type=jnp.float32)
        h = jnp.maximum(h + b2_ref[...], 0.0)

        # Layer 2: Linear(D->D)
        out_ref[...] = jnp.dot(h.astype(jnp.bfloat16), w3_ref[...],
                               preferred_element_type=jnp.float32)


def _fused_projector(feats, w1f, w2f, w3f, b1, b2):
    """feats: (rows, T, C) bf16 (all branches stacked). Returns (rows, D) f32."""
    rows, T, C = feats.shape
    D = w1f.shape[1]

    row_block = min(ROW_BLOCK_CAP, _round_up(rows, 8))
    rows_p = _round_up(rows, row_block)
    t_block = T if T <= T_BLOCK_CAP else T_BLOCK_CAP
    T_p = _round_up(T, t_block)

    if rows_p != rows or T_p != T:
        # Zero-padding is harmless: padded rows are sliced away, padded time
        # steps contribute 0 to the sum.
        feats = jnp.pad(feats, ((0, rows_p - rows), (0, T_p - T), (0, 0)))

    grid = (rows_p // row_block, T_p // t_block)

    out = pl.pallas_call(
        _projector_kernel,
        out_shape=jax.ShapeDtypeStruct((rows_p, D), jnp.float32),
        grid_spec=pltpu.PrefetchScalarGridSpec(
            num_scalar_prefetch=0,
            grid=grid,
            in_specs=[
                pl.BlockSpec((row_block, t_block, C), lambda i, t: (i, t, 0)),
                # Weights / biases stay resident (same block every grid step).
                pl.BlockSpec((C, D), lambda i, t: (0, 0)),
                pl.BlockSpec((D, D), lambda i, t: (0, 0)),
                pl.BlockSpec((D, D), lambda i, t: (0, 0)),
                pl.BlockSpec((1, D), lambda i, t: (0, 0)),
                pl.BlockSpec((1, D), lambda i, t: (0, 0)),
            ],
            out_specs=pl.BlockSpec((row_block, D), lambda i, t: (i, 0)),
            scratch_shapes=[pltpu.VMEM((row_block, C), jnp.float32)],
        ),
        compiler_params=pltpu.CompilerParams(
            dimension_semantics=("parallel", "arbitrary")),
    )(feats, w1f, w2f, w3f, b1, b2)

    return out[:rows]


@jax.jit
def triplet_loss_net_forward(anchor_feats, positive_feats, negative_feats, params):
    """Mirrors TripletLossNet.forward, starting from backbone extract_features."""
    B, T, C = anchor_feats.shape

    # Fold eval-mode BatchNorm (running stats) and the 1/T of the mean pooling
    # into the linear weights; done once under jit.
    scale1 = params["bn1_gamma"] * jax.lax.rsqrt(params["bn1_var"] + BN_EPS)
    bias1 = params["bn1_beta"] - params["bn1_mean"] * scale1
    scale2 = params["bn2_gamma"] * jax.lax.rsqrt(params["bn2_var"] + BN_EPS)
    bias2 = params["bn2_beta"] - params["bn2_mean"] * scale2

    # PyTorch Linear weight is (out, in); kernel wants (in, out) for x @ W.
    w1f = (params["w1"].T * scale1[None, :] * (1.0 / T)).astype(jnp.bfloat16)
    w2f = (params["w2"].T * scale2[None, :]).astype(jnp.bfloat16)
    w3f = params["w3"].T.astype(jnp.bfloat16)
    b1 = bias1[None, :].astype(jnp.float32)
    b2 = bias2[None, :].astype(jnp.float32)

    # Dropout(p=0.5) is identity in eval mode (deterministic forward).
    # Fuse all three branches into one kernel launch.
    feats = jnp.concatenate(
        [anchor_feats, positive_feats, negative_feats], axis=0
    ).astype(jnp.bfloat16)                                   # (3B, T, C)

    out = _fused_projector(feats, w1f, w2f, w3f, b1, b2)     # (3B, D)
    a, p, n = jnp.split(out, 3, axis=0)
    return a, p, n


def init_params(key, output_size, in_dim=512):
    D = output_size
    k1, k2, k3, k4, k5 = jax.random.split(key, 5)
    return {
        # PyTorch Linear weight convention: (out_features, in_features)
        "w1": 0.02 * jax.random.normal(k1, (D, in_dim), jnp.float32),
        "w2": 0.02 * jax.random.normal(k2, (D, D), jnp.float32),
        "w3": 0.02 * jax.random.normal(k3, (D, D), jnp.float32),
        # BatchNorm1d affine params + running stats (eval mode)
        "bn1_gamma": 1.0 + 0.1 * jax.random.normal(k4, (D,), jnp.float32),
        "bn1_beta": jnp.zeros((D,), jnp.float32),
        "bn1_mean": jnp.zeros((D,), jnp.float32),
        "bn1_var": jnp.ones((D,), jnp.float32),
        "bn2_gamma": 1.0 + 0.1 * jax.random.normal(k5, (D,), jnp.float32),
        "bn2_beta": jnp.zeros((D,), jnp.float32),
        "bn2_mean": jnp.zeros((D,), jnp.float32),
        "bn2_var": jnp.ones((D,), jnp.float32),
    }


if __name__ == "__main__":
    B, T, C = 8, 16, 512       # (batch, time, feature) backbone extract_features
    OUTPUT_SIZE = 128

    key = jax.random.PRNGKey(0)
    ka, kp, kn, kw = jax.random.split(key, 4)
    anchor_feats = jax.random.normal(ka, (B, T, C), jnp.float32)
    positive_feats = jax.random.normal(kp, (B, T, C), jnp.float32)
    negative_feats = jax.random.normal(kn, (B, T, C), jnp.float32)

    params = init_params(kw, OUTPUT_SIZE, in_dim=C)

    a_out, p_out, n_out = triplet_loss_net_forward(
        anchor_feats, positive_feats, negative_feats, params
    )
    jax.block_until_ready((a_out, p_out, n_out))

    assert a_out.shape == (B, OUTPUT_SIZE)
    assert p_out.shape == (B, OUTPUT_SIZE)
    assert n_out.shape == (B, OUTPUT_SIZE)
    print("KERNEL_OK")
</pallas_src>

<mosaic_0001>
module attributes {stable_mosaic.version = 11 : i64} {
  func.func @_projector_kernel(%arg0: i32, %arg1: i32, %arg2: memref<24x16x512xbf16, #tpu.memory_space<vmem>>, %arg3: memref<512x128xbf16, #tpu.memory_space<vmem>>, %arg4: memref<128x128xbf16, #tpu.memory_space<vmem>>, %arg5: memref<128x128xbf16, #tpu.memory_space<vmem>>, %arg6: memref<1x128xf32, #tpu.memory_space<vmem>>, %arg7: memref<1x128xf32, #tpu.memory_space<vmem>>, %arg8: memref<24x128xf32, #tpu.memory_space<vmem>>, %arg9: memref<24x512xf32, #tpu.memory_space<vmem>>) attributes {dimension_semantics = [#tpu.dimension_semantics<parallel>, #tpu.dimension_semantics<arbitrary>], iteration_bounds = array<i64: 1, 1>, scalar_prefetch = 0 : i64, scratch_operands = 1 : i64, tpu.core_type = #tpu.core_type<tc>, window_params = [{transform_indices = @transform_0, window_bounds = array<i64: 24, 16, 512>}, {pipeline_mode = #tpu.pipeline_mode<synchronous>, transform_indices = @transform_1, window_bounds = array<i64: 512, 128>}, {pipeline_mode = #tpu.pipeline_mode<synchronous>, transform_indices = @transform_2, window_bounds = array<i64: 128, 128>}, {pipeline_mode = #tpu.pipeline_mode<synchronous>, transform_indices = @transform_3, window_bounds = array<i64: 128, 128>}, {pipeline_mode = #tpu.pipeline_mode<synchronous>, transform_indices = @transform_4, window_bounds = array<i64: 1, 128>}, {pipeline_mode = #tpu.pipeline_mode<synchronous>, transform_indices = @transform_5, window_bounds = array<i64: 1, 128>}, {transform_indices = @transform_6, window_bounds = array<i64: 24, 128>}]} {
    %c0_i32 = arith.constant 0 : i32
    %0 = arith.cmpi eq, %arg1, %c0_i32 : i32
    %1 = arith.extui %0 : i1 to i32
    %c0_i32_0 = arith.constant 0 : i32
    %2 = arith.cmpi ne, %1, %c0_i32_0 : i32
    scf.if %2 {
      %cst_9 = arith.constant 0.000000e+00 : f32
      %12 = vector.broadcast %cst_9 : f32 to vector<24x512xf32>
      %c0_10 = arith.constant 0 : index
      %c0_11 = arith.constant 0 : index
      %13 = vector.load %arg9[%c0_10, %c0_11] : memref<24x512xf32, #tpu.memory_space<vmem>>, vector<24x512xf32>
      tpu.vector_store %arg9[%c0_10, %c0_11], %12 {strides = array<i32>} : memref<24x512xf32, #tpu.memory_space<vmem>>, vector<24x512xf32>,
    } else {
    }
    %c0 = arith.constant 0 : index
    %c0_1 = arith.constant 0 : index
    %3 = vector.load %arg9[%c0, %c0_1] : memref<24x512xf32, #tpu.memory_space<vmem>>, vector<24x512xf32>
    %c0_2 = arith.constant 0 : index
    %c0_3 = arith.constant 0 : index
    %c0_4 = arith.constant 0 : index
    %4 = vector.load %arg2[%c0_2, %c0_3, %c0_4] : memref<24x16x512xbf16, #tpu.memory_space<vmem>>, vector<24x16x512xbf16>
    %5 = arith.extf %4 : vector<24x16x512xbf16> to vector<24x16x512xf32>
    %cst = arith.constant dense<0.000000e+00> : vector<24x512xf32>
    %6 = vector.multi_reduction <add>, %5, %cst [1] : vector<24x16x512xf32> to vector<24x512xf32>
    %7 = arith.addf %3, %6 : vector<24x512xf32>
    %c0_5 = arith.constant 0 : index
    %c0_6 = arith.constant 0 : index
    %8 = vector.load %arg9[%c0_5, %c0_6] : memref<24x512xf32, #tpu.memory_space<vmem>>, vector<24x512xf32>
    tpu.vector_store %arg9[%c0_5, %c0_6], %7 {strides = array<i32>} : memref<24x512xf32, #tpu.memory_space<vmem>>, vector<24x512xf32>,
    %c0_i32_7 = arith.constant 0 : i32
    %9 = arith.cmpi eq, %arg1, %c0_i32_7 : i32
    %10 = arith.extui %9 : i1 to i32
    %c0_i32_8 = arith.constant 0 : i32
    %11 = arith.cmpi ne, %10, %c0_i32_8 : i32
    scf.if %11 {
      %c0_9 = arith.constant 0 : index
      %c0_10 = arith.constant 0 : index
      %12 = vector.load %arg9[%c0_9, %c0_10] : memref<24x512xf32, #tpu.memory_space<vmem>>, vector<24x512xf32>
      %13 = arith.truncf %12 : vector<24x512xf32> to vector<24x512xbf16>
      %c0_11 = arith.constant 0 : index
      %c0_12 = arith.constant 0 : index
      %14 = vector.load %arg3[%c0_11, %c0_12] : memref<512x128xbf16, #tpu.memory_space<vmem>>, vector<512x128xbf16>
      %cst_13 = arith.constant dense<0.000000e+00> : vector<24x128xf32>
      %15 = tpu.matmul %13, %14, %cst_13 {dimension_numbers = #tpu.dot_dimension_numbers<[1], [0], [0], [1], [0, 0, 1, 1], [], []>} : vector<24x512xbf16>, vector<512x128xbf16>, vector<24x128xf32> -> vector<24x128xf32>
      %c0_14 = arith.constant 0 : index
      %c0_15 = arith.constant 0 : index
      %16 = vector.load %arg6[%c0_14, %c0_15] : memref<1x128xf32, #tpu.memory_space<vmem>>, vector<1x128xf32>
      %17 = vector.broadcast %16 : vector<1x128xf32> to vector<24x128xf32>
      %18 = arith.addf %15, %17 : vector<24x128xf32>
      %cst_16 = arith.constant 0.000000e+00 : f32
      %19 = vector.broadcast %cst_16 : f32 to vector<24x128xf32>
      %20 = arith.maximumf %18, %19 : vector<24x128xf32>
      %21 = arith.truncf %20 : vector<24x128xf32> to vector<24x128xbf16>
      %c0_17 = arith.constant 0 : index
      %c0_18 = arith.constant 0 : index
      %22 = vector.load %arg4[%c0_17, %c0_18] : memref<128x128xbf16, #tpu.memory_space<vmem>>, vector<128x128xbf16>
      %cst_19 = arith.constant dense<0.000000e+00> : vector<24x128xf32>
      %23 = tpu.matmul %21, %22, %cst_19 {dimension_numbers = #tpu.dot_dimension_numbers<[1], [0], [0], [1], [0, 0, 1, 1], [], []>} : vector<24x128xbf16>, vector<128x128xbf16>, vector<24x128xf32> -> vector<24x128xf32>
      %c0_20 = arith.constant 0 : index
      %c0_21 = arith.constant 0 : index
      %24 = vector.load %arg7[%c0_20, %c0_21] : memref<1x128xf32, #tpu.memory_space<vmem>>, vector<1x128xf32>
      %25 = vector.broadcast %24 : vector<1x128xf32> to vector<24x128xf32>
      %26 = arith.addf %23, %25 : vector<24x128xf32>
      %cst_22 = arith.constant 0.000000e+00 : f32
      %27 = vector.broadcast %cst_22 : f32 to vector<24x128xf32>
      %28 = arith.maximumf %26, %27 : vector<24x128xf32>
      %29 = arith.truncf %28 : vector<24x128xf32> to vector<24x128xbf16>
      %c0_23 = arith.constant 0 : index
      %c0_24 = arith.constant 0 : index
      %30 = vector.load %arg5[%c0_23, %c0_24] : memref<128x128xbf16, #tpu.memory_space<vmem>>, vector<128x128xbf16>
      %cst_25 = arith.constant dense<0.000000e+00> : vector<24x128xf32>
      %31 = tpu.matmul %29, %30, %cst_25 {dimension_numbers = #tpu.dot_dimension_numbers<[1], [0], [0], [1], [0, 0, 1, 1], [], []>} : vector<24x128xbf16>, vector<128x128xbf16>, vector<24x128xf32> -> vector<24x128xf32>
      %c0_26 = arith.constant 0 : index
      %c0_27 = arith.constant 0 : index
      %32 = vector.load %arg8[%c0_26, %c0_27] : memref<24x128xf32, #tpu.memory_space<vmem>>, vector<24x128xf32>
      tpu.vector_store %arg8[%c0_26, %c0_27], %31 {strides = array<i32>} : memref<24x128xf32, #tpu.memory_space<vmem>>, vector<24x128xf32>,
    } else {
    }
    return
  }
  func.func @transform_0(%arg0: i32, %arg1: i32) -> (i32, i32, i32) {
    %c0_i32 = arith.constant 0 : i32
    %c0_i32_0 = arith.constant 0 : i32
    return %arg0, %arg1, %c0_i32 : i32, i32, i32
  }
  func.func @transform_1(%arg0: i32, %arg1: i32) -> (i32, i32) {
    %c0_i32 = arith.constant 0 : i32
    %c0_i32_0 = arith.constant 0 : i32
    %c0_i32_1 = arith.constant 0 : i32
    return %c0_i32, %c0_i32_0 : i32, i32
  }
  func.func @transform_2(%arg0: i32, %arg1: i32) -> (i32, i32) {
    %c0_i32 = arith.constant 0 : i32
    %c0_i32_0 = arith.constant 0 : i32
    %c0_i32_1 = arith.constant 0 : i32
    return %c0_i32, %c0_i32_0 : i32, i32
  }
  func.func @transform_3(%arg0: i32, %arg1: i32) -> (i32, i32) {
    %c0_i32 = arith.constant 0 : i32
    %c0_i32_0 = arith.constant 0 : i32
    %c0_i32_1 = arith.constant 0 : i32
    return %c0_i32, %c0_i32_0 : i32, i32
  }
  func.func @transform_4(%arg0: i32, %arg1: i32) -> (i32, i32) {
    %c0_i32 = arith.constant 0 : i32
    %c0_i32_0 = arith.constant 0 : i32
    %c0_i32_1 = arith.constant 0 : i32
    return %c0_i32, %c0_i32_0 : i32, i32
  }
  func.func @transform_5(%arg0: i32, %arg1: i32) -> (i32, i32) {
    %c0_i32 = arith.constant 0 : i32
    %c0_i32_0 = arith.constant 0 : i32
    %c0_i32_1 = arith.constant 0 : i32
    return %c0_i32, %c0_i32_0 : i32, i32
  }
  func.func @transform_6(%arg0: i32, %arg1: i32) -> (i32, i32) {
    %c0_i32 = arith.constant 0 : i32
    %c0_i32_0 = arith.constant 0 : i32
    return %arg0, %c0_i32 : i32, i32
  }
}

</mosaic_0001>

<bundles_post_ra>
// kernel: triplet_loss_net_forward.1
= control target key start
LH: loop header
LB: loop body
LE: loop exit
PB: predicated region body
PF: predicated region fallthrough
CT: control target
= control target key end

     0   :  { %vm1108_vm0 = vcmask 1041409   ;;  %vm1110_vm1 = vcmask 1042434   ;;  %vm1112_vm2 = vcmask 1043459   ;;  %vm1114_vm3 = vcmask 1044484   ;;  %s3331_s1 = inlined_call_operand.vmem [shape: bf16[512,128], index: 1, kind: input, shape index: {}]   ;;  %s3332_s0 = inlined_call_operand.vmem [shape: bf16[24,16,512], index: 0, kind: input, shape index: {}]   ;;  %s3333_s2 = inlined_call_operand.vmem [shape: bf16[128,128], index: 2, kind: input, shape index: {}]   ;;  %s3334_s3 = inlined_call_operand.vmem [shape: bf16[128,128], index: 3, kind: input, shape index: {}]   ;;  %s3335_s4 = inlined_call_operand.vmem [shape: f32[1,128], index: 4, kind: input, shape index: {}]   ;;  %s3336_s5 = inlined_call_operand.vmem [shape: f32[1,128], index: 5, kind: input, shape index: {}]   ;;  %s3337_s6 = inlined_call_operand.vmem [shape: f32[24,128], index: 6, kind: output, shape index: {}]  }
   0x1   :  { %v2031_v0 = vld [vmem:[%s3331_s1 + $0x40] sm:$0xff]   ;;  %v2035_v4 = vld [vmem:[%s3331_s1 + $0x48] sm:$0xff]   ;;  %v2039_v8 = vld [vmem:[%s3331_s1 + $0x50] sm:$0xff]   ;;  %vm1116_vm4 = vcmask 1045509   ;;  %vm1118_vm5 = vcmask 1046534   ;;  %vm1120_vm6 = vcmask 1047559  }
   0x2   :  { %v2032_v1 = vld [vmem:[%s3331_s1 + $0xc0] sm:$0xff]   ;;  %1915 = vmatprep.subr.bf16.mxu0 %v2031_v0  ;;  %v2036_v5 = vld [vmem:[%s3331_s1 + $0xc8] sm:$0xff]   ;;  %v2040_v9 = vld [vmem:[%s3331_s1 + $0xd0] sm:$0xff]  }
   0x3   :  { %v2033_v2 = vld [vmem:[%s3331_s1] sm:$0xff]   ;;  %1943 = vmatprep.subr.bf16.mxu1 %v2032_v1  ;;  %v2037_v6 = vld [vmem:[%s3331_s1 + $0x8] sm:$0xff]   ;;  %v2041_v10 = vld [vmem:[%s3331_s1 + $0x10] sm:$0xff]  }
   0x4   :  { %v2034_v3 = vld [vmem:[%s3331_s1 + $0x80] sm:$0xff]   ;;  %1916 = vmatpush3.bf16.msra.mxu0 %v2033_v2  ;;  %v2038_v7 = vld [vmem:[%s3331_s1 + $0x88] sm:$0xff]   ;;  %v2042_v11 = vld [vmem:[%s3331_s1 + $0x90] sm:$0xff]  }
   0x5   :  { %1944 = vmatpush3.bf16.msra.mxu1 %v2034_v3  ;;  %1917 = vmatprep.subr.bf16.mxu0 %v2035_v4  ;;  %v2043_v12 = vld [vmem:[%s3331_s1 + $0x58] sm:$0xff]   ;;  %v2047_v16 = vld [vmem:[%s3331_s1 + $0x60] sm:$0xff]   ;;  %v2051_v20 = vld [vmem:[%s3331_s1 + $0x68] sm:$0xff]  }
   0x6   :  { %1945 = vmatprep.subr.bf16.mxu1 %v2036_v5  ;;  %v2044_v13 = vld [vmem:[%s3331_s1 + $0xd8] sm:$0xff]   ;;  %v2048_v17 = vld [vmem:[%s3331_s1 + $0xe0] sm:$0xff]   ;;  %v2052_v21 = vld [vmem:[%s3331_s1 + $0xe8] sm:$0xff]  }
   0x7   :  { %v2045_v14 = vld [vmem:[%s3331_s1 + $0x18] sm:$0xff]   ;;  %v2049_v18 = vld [vmem:[%s3331_s1 + $0x20] sm:$0xff]   ;;  %v2053_v22 = vld [vmem:[%s3331_s1 + $0x28] sm:$0xff]  }
   0x8   :  { %1918 = vmatpush3.bf16.msra.mxu0 %v2037_v6  ;;  %v2046_v15 = vld [vmem:[%s3331_s1 + $0x98] sm:$0xff]   ;;  %v2050_v19 = vld [vmem:[%s3331_s1 + $0xa0] sm:$0xff]   ;;  %v2054_v23 = vld [vmem:[%s3331_s1 + $0xa8] sm:$0xff]  }
   0x9   :  { %1946 = vmatpush3.bf16.msra.mxu1 %v2038_v7  ;;  %1919 = vmatprep.subr.bf16.mxu0 %v2039_v8  ;;  %v2055_v24 = vld [vmem:[%s3331_s1 + $0x70] sm:$0xff]   ;;  %v2059_v28 = vld [vmem:[%s3331_s1 + $0x78] sm:$0xff]   ;;  %v2213_v32 = vld [vmem:[%s3332_s0] sm:$0xff] }
   0xa   :  { %1947 = vmatprep.subr.bf16.mxu1 %v2040_v9  ;;  %v2056_v25 = vld [vmem:[%s3331_s1 + $0xf0] sm:$0xff]   ;;  %v2060_v29 = vld [vmem:[%s3331_s1 + $0xf8] sm:$0xff]   ;;  %v2223_v34 = vld [vmem:[%s3332_s0 + $0x20] sm:$0xff]  ;;  %v149_v39 = vunpack.c.h.bf16 %v2213_v32 }
   0xb   :  { %v2057_v26 = vld [vmem:[%s3331_s1 + $0x30] sm:$0xff]   ;;  %v2061_v30 = vld [vmem:[%s3331_s1 + $0x38] sm:$0xff]   ;;  %v2233_v36 = vld [vmem:[%s3332_s0 + $0x40] sm:$0xff]  ;;  %v157_v46 = vunpack.c.h.bf16 %v2223_v34 }
   0xc   :  { %1920 = vmatpush3.bf16.msra.mxu0 %v2041_v10  ;;  %v2058_v27 = vld [vmem:[%s3331_s1 + $0xb0] sm:$0xff]   ;;  %v2062_v31 = vld [vmem:[%s3331_s1 + $0xb8] sm:$0xff]   ;;  %v2247_v42 = vld [vmem:[%s3332_s0 + $0x60] sm:$0xff]  ;;  %v165_v53 = vunpack.c.h.bf16 %v2233_v36 }
   0xd   :  { %1948 = vmatpush3.bf16.msra.mxu1 %v2042_v11  ;;  %1921 = vmatprep.subr.bf16.mxu0 %v2043_v12  ;;  %v2218_v33 = vld [vmem:[%s3332_s0 + $0x10] sm:$0xff]  ;;  %v2257_v44 = vld [vmem:[%s3332_s0 + $0x80] sm:$0xff]  ;;  %v173_v59 = vunpack.c.h.bf16 %v2247_v42 }
   0xe   :  { %1949 = vmatprep.subr.bf16.mxu1 %v2044_v13  ;;  %v2228_v35 = vld [vmem:[%s3332_s0 + $0x30] sm:$0xff]  ;;  %v153_v41 = vunpack.c.h.bf16 %v2218_v33  ;;  %v2271_v50 = vld [vmem:[%s3332_s0 + $0xa0] sm:$0xff]  ;;  %v181_v1 = vunpack.c.h.bf16 %v2257_v44 }
   0xf   :  { %v2238_v37 = vld [vmem:[%s3332_s0 + $0x50] sm:$0xff]  ;;  %v161_v48 = vunpack.c.h.bf16 %v2228_v35  ;;  %v2285_v56 = vld [vmem:[%s3332_s0 + $0xc0] sm:$0xff]  ;;  %v189_v7 = vunpack.c.h.bf16 %v2271_v50 }
  0x10   :  { %1922 = vmatpush3.bf16.msra.mxu0 %v2045_v14  ;;  %v2252_v43 = vld [vmem:[%s3332_s0 + $0x70] sm:$0xff]  ;;  %v169_v55 = vunpack.c.h.bf16 %v2238_v37  ;;  %3385 = vst [vmem:[#allocation3_spill] sm:$0xff] %v2285_v56  ;;  %v2299_v62 = vld [vmem:[%s3332_s0 + $0xe0] sm:$0xff]  ;;  %v197_v13 = vunpack.c.h.bf16 %v2285_v56  ;;  %v347_v40 = vadd.f32 %v153_v41, %v149_v39 }
  0x11   :  { %1950 = vmatpush3.bf16.msra.mxu1 %v2046_v15  ;;  %1923 = vmatprep.subr.bf16.mxu0 %v2047_v16  ;;  %v2266_v49 = vld [vmem:[%s3332_s0 + $0x90] sm:$0xff]  ;;  %v177_v61 = vunpack.c.h.bf16 %v2252_v43  ;;  %3387 = vst [vmem:[#allocation5_spill] sm:$0xff] %v2299_v62  ;;  %v2313_v4 = vld [vmem:[%s3332_s0 + $0x100] sm:$0xff]  ;;  %v375_v54 = vadd.f32 %v161_v48, %v157_v46 }
  0x12   :  { %1951 = vmatprep.subr.bf16.mxu1 %v2048_v17  ;;  %v2276_v51 = vld [vmem:[%s3332_s0 + $0xb0] sm:$0xff]  ;;  %v185_v3 = vunpack.c.h.bf16 %v2266_v49  ;;  %v2327_v10 = vld [vmem:[%s3332_s0 + $0x120] sm:$0xff]  ;;  %v403_v52 = vadd.f32 %v169_v55, %v165_v53  ;;  %v348_v0 = vrot.slane %v347_v40, 4 }
  0x13   :  { %v2290_v57 = vld [vmem:[%s3332_s0 + $0xd0] sm:$0xff]  ;;  %v193_v9 = vunpack.c.h.bf16 %v2276_v51  ;;  %3390 = vst [vmem:[#allocation8_spill] sm:$0xff] %v2327_v10  ;;  %v2341_v16 = vld [vmem:[%s3332_s0 + $0x140] sm:$0xff]  ;;  %v431_v47 = vadd.f32 %v177_v61, %v173_v59  ;;  %v376_v46 = vrot.slane %v375_v54, 4 }
  0x14   :  { %1924 = vmatpush3.bf16.msra.mxu0 %v2049_v18  ;;  %3386 = vst [vmem:[#allocation4_spill] sm:$0xff] %v2290_v57  ;;  %v2304_v63 = vld [vmem:[%s3332_s0 + $0xf0] sm:$0xff]  ;;  %v201_v15 = vunpack.c.h.bf16 %v2290_v57  ;;  %3392 = vst [vmem:[#allocation10_spill] sm:$0xff] %v2341_v16  ;;  %v2397_v8 = vld [vmem:[%s3332_s0 + $0x1c0] sm:$0xff]  ;;  %v459_v39 = vadd.f32 %v185_v3, %v181_v1  ;;  %v404_v48 = vrot.slane %v403_v52, 4 }
  0x15   :  { %1952 = vmatpush3.bf16.msra.mxu1 %v2050_v19  ;;  %1925 = vmatprep.subr.bf16.mxu0 %v2051_v20  ;;  %3388 = vst [vmem:[#allocation6_spill] sm:$0xff] %v2304_v63  ;;  %v2318_v5 = vld [vmem:[%s3332_s0 + $0x110] sm:$0xff]  ;;  %v205_v19 = vunpack.c.h.bf16 %v2299_v62  ;;  %v2383_v20 = vld [vmem:[%s3332_s0 + $0x1a0] sm:$0xff]  ;;  %3400 = vst [vmem:[#allocation18_spill] sm:$0xff] %v2397_v8  ;;  %v487_v41 = vadd.f32 %v193_v9, %v189_v7  ;;  %v432_v2 = vrot.slane %v431_v47, 4 }
  0x16   :  { %1953 = vmatprep.subr.bf16.mxu1 %v2052_v21  ;;  %3389 = vst [vmem:[#allocation7_spill] sm:$0xff] %v2318_v5  ;;  %v2332_v11 = vld [vmem:[%s3332_s0 + $0x130] sm:$0xff]  ;;  %v209_v21 = vunpack.c.h.bf16 %v2304_v63  ;;  %3398 = vst [vmem:[#allocation16_spill] sm:$0xff] %v2383_v20  ;;  %v2411_v60 = vld [vmem:[%s3332_s0 + $0x1e0] sm:$0xff]  ;;  %v515_v12 = vadd.f32 %v201_v15, %v197_v13  ;;  %v460_v14 = vrot.slane %v459_v39, 4 }
  0x17   :  { %3391 = vst [vmem:[#allocation9_spill] sm:$0xff] %v2332_v11  ;;  %v2346_v17 = vld [vmem:[%s3332_s0 + $0x150] sm:$0xff]  ;;  %3402 = vst [vmem:[#allocation20_spill] sm:$0xff] %v2411_v60  ;;  %v488_v38 = vrot.slane %v487_v41, 4  ;;  %v433_v59 = vadd.f32 %v432_v2, %v431_v47 }
  0x18   :  { %1926 = vmatpush3.bf16.msra.mxu0 %v2053_v22  ;;  %3393 = vst [vmem:[#allocation11_spill] sm:$0xff] %v2346_v17  ;;  %v2355_v22 = vld [vmem:[%s3332_s0 + $0x160] sm:$0xff]  ;;  %v2388_v18 = vld [vmem:[%s3332_s0 + $0x1b0] sm:$0xff]  ;;  %v543_v45 = vadd.f32 %v209_v21, %v205_v19  ;;  %v516_v53 = vrot.slane %v515_v12, 4  ;;  %v461_v61 = vadd.f32 %v460_v14, %v459_v39 }
  0x19   :  { %1954 = vmatpush3.bf16.msra.mxu1 %v2054_v23  ;;  %1927 = vmatprep.subr.bf16.mxu0 %v2055_v24  ;;  %3394 = vst [vmem:[#allocation12_spill] sm:$0xff] %v2355_v22  ;;  %v2360_v23 = vld [vmem:[%s3332_s0 + $0x170] sm:$0xff]  ;;  %3399 = vst [vmem:[#allocation17_spill] sm:$0xff] %v2388_v18  ;;  %v349_v24 = vadd.f32 %v348_v0, %v347_v40  ;;  %v434_v9 = vrot.slane %v433_v59, 2 }
  0x1a   :  { %1955 = vmatprep.subr.bf16.mxu1 %v2056_v25  ;;  %3395 = vst [vmem:[#allocation13_spill] sm:$0xff] %v2360_v23  ;;  %v2402_v6 = vld [vmem:[%s3332_s0 + $0x1d0] sm:$0xff]  ;;  %v544_v55 = vrot.slane %v543_v45, 4  ;;  %v462_v13 = vrot.slane %v461_v61, 2 }
  0x1b   :  { %3401 = vst [vmem:[#allocation19_spill] sm:$0xff] %v2402_v6  ;;  %v2416_v58 = vld [vmem:[%s3332_s0 + $0x1f0] sm:$0xff]  ;;  %v350_v1 = vrot.slane %v349_v24, 2  ;;  %v435_v56 = vadd.f32 %v434_v9, %v433_v59 }
  0x1c   :  { %1928 = vmatpush3.bf16.msra.mxu0 %v2057_v26  ;;  %3403 = vst [vmem:[#allocation21_spill] sm:$0xff] %v2416_v58  ;;  %v405_v26 = vadd.f32 %v404_v48, %v403_v52  ;;  %v545_v25 = vadd.f32 %v544_v55, %v543_v45  ;;  %v463_v40 = vadd.f32 %v462_v13, %v461_v61  ;;  %v3405_v55 = vunpack.c.h.bf16 %v2318_v5 }
  0x1d   :  { %1956 = vmatpush3.bf16.msra.mxu1 %v2058_v27  ;;  %1929 = vmatprep.subr.bf16.mxu0 %v2059_v28  ;;  %v2369_v28 = vld [vmem:[%s3332_s0 + $0x180] sm:$0xff]  ;;  %v517_v27 = vadd.f32 %v516_v53, %v515_v12  ;;  %v351_v63 = vadd.f32 %v350_v1, %v349_v24  ;;  %v436_v45 = vrot.slane %v435_v56, 1  ;;  %v3404_v53 = vunpack.c.h.bf16 %v2313_v4 }
  0x1e   :  { %1957 = vmatprep.subr.bf16.mxu1 %v2060_v29  ;;  %3396 = vst [vmem:[#allocation14_spill] sm:$0xff] %v2369_v28  ;;  %v2374_v29 = vld [vmem:[%s3332_s0 + $0x190] sm:$0xff]  ;;  %v406_v7 = vrot.slane %v405_v26, 2  ;;  %v546_v21 = vrot.slane %v545_v25, 2  ;;  %v464_v12 = vrot.slane %v463_v40, 1  ;;  %v3409_v61 = vunpack.c.h.bf16 %v2346_v17 }
  0x1f   :  { %3397 = vst [vmem:[#allocation15_spill] sm:$0xff] %v2374_v29  ;;  %v518_v19 = vrot.slane %v517_v27, 2  ;;  %v352_v0 = vrot.slane %v351_v63, 1  ;;  %v3412_v13 = vunpack.c.h.bf16 %v2369_v28 }
  0x20   :  { %1930 = vmatpush3.bf16.msra.mxu0 %v2061_v30  ;;  %v377_v30 = vadd.f32 %v376_v46, %v375_v54  ;;  %v407_v57 = vadd.f32 %v406_v7, %v405_v26  ;;  %v547_v47 = vadd.f32 %v546_v21, %v545_v25  ;;  %v2460_v26 = vadd.f32 %v436_v45, %v435_v56 }
  0x21   :  { %1958 = vmatpush3.bf16.msra.mxu1 %v2062_v31  ;;  %v489_v31 = vadd.f32 %v488_v38, %v487_v41  ;;  %v519_v52 = vadd.f32 %v518_v19, %v517_v27  ;;  %v2454_v46 = vadd.f32 %v352_v0, %v351_v63  ;;  %v571_v63 = vadd.f32 %v3405_v55, %v3404_v53 }
  0x22   :  { %v378_v3 = vrot.slane %v377_v30, 2  ;;  %v408_v2 = vrot.slane %v407_v57, 1  ;;  %v548_v41 = vrot.slane %v547_v47, 1  ;;  %v3408_v56 = vunpack.c.h.bf16 %v2341_v16 }
  0x23   :  { %v490_v15 = vrot.slane %v489_v31, 2  ;;  %v520_v39 = vrot.slane %v519_v52, 1  ;;  %v3411_v7 = vunpack.c.h.bf16 %v2360_v23  ;;  %v3414_v21 = vunpack.c.h.bf16 %v2383_v20 }
  0x24   :  { %v379_v62 = vadd.f32 %v378_v3, %v377_v30  ;;  %v2458_v24 = vadd.f32 %v408_v2, %v407_v57  ;;  %v2462_v30 = vadd.f32 %v464_v12, %v463_v40  ;;  %v3407_v57 = vunpack.c.h.bf16 %v2332_v11 }
  0x25   :  { %v491_v54 = vadd.f32 %v490_v15, %v489_v31  ;;  %v2466_v25 = vadd.f32 %v520_v39, %v519_v52  ;;  %v2468_v31 = vadd.f32 %v548_v41, %v547_v47  ;;  %v627_v1 = vadd.f32 %v3409_v61, %v3408_v56 }
  0x26   :  { %v380_v38 = vrot.slane %v379_v62, 1  ;;  %v3410_v3 = vunpack.c.h.bf16 %v2355_v22  ;;  %v3413_v15 = vunpack.c.h.bf16 %v2374_v29  ;;  %v3415_v40 = vunpack.c.h.bf16 %v2388_v18 }
  0x27   :  { %v492_v14 = vrot.slane %v491_v54, 1  ;;  %v3416_v52 = vunpack.c.h.bf16 %v2397_v8  ;;  %v3417_v47 = vunpack.c.h.bf16 %v2402_v6  ;;  %v3419_v2 = vunpack.c.h.bf16 %v2416_v58 }
  0x28   :  { %v2456_v48 = vadd.f32 %v380_v38, %v379_v62  ;;  %v3406_v62 = vunpack.c.h.bf16 %v2327_v10  ;;  %v655_v9 = vadd.f32 %v3411_v7, %v3410_v3  ;;  %v683_v19 = vadd.f32 %v3413_v15, %v3412_v13 }
  0x29   :  { %v2464_v27 = vadd.f32 %v492_v14, %v491_v54  ;;  %v711_v54 = vadd.f32 %v3415_v40, %v3414_v21  ;;  %v739_v0 = vadd.f32 %v3417_v47, %v3416_v52  ;;  %v3418_v38 = vunpack.c.h.bf16 %v2411_v60 }
  0x2a   :  { %v599_v59 = vadd.f32 %v3407_v57, %v3406_v62  ;;  %v572_v12 = vrot.slane %v571_v63, 4  ;;  %v628_v39 = vrot.slane %v627_v1, 4  ;;  %v656_v41 = vrot.slane %v655_v9, 4 }
  0x2b   :  { %v767_v45 = vadd.f32 %v3419_v2, %v3418_v38  ;;  %v684_v53 = vrot.slane %v683_v19, 4  ;;  %v712_v55 = vrot.slane %v711_v54, 4  ;;  %v740_v62 = vrot.slane %v739_v0, 4 }
  0x2c   :  { %v600_v14 = vrot.slane %v599_v59, 4  ;;  %v573_v56 = vadd.f32 %v572_v12, %v571_v63  ;;  %v629_v3 = vadd.f32 %v628_v39, %v627_v1  ;;  %v657_v7 = vadd.f32 %v656_v41, %v655_v9 }
  0x2d   :  { %v768_v57 = vrot.slane %v767_v45, 4  ;;  %v685_v13 = vadd.f32 %v684_v53, %v683_v19  ;;  %v713_v15 = vadd.f32 %v712_v55, %v711_v54  ;;  %v741_v21 = vadd.f32 %v740_v62, %v739_v0 }
  0x2e   :  { %v601_v61 = vadd.f32 %v600_v14, %v599_v59  ;;  %v574_v52 = vrot.slane %v573_v56, 2  ;;  %v630_v38 = vrot.slane %v629_v3, 2  ;;  %v658_v2 = vrot.slane %v657_v7, 2 }
  0x2f   :  { %v769_v40 = vadd.f32 %v768_v57, %v767_v45  ;;  %v686_v58 = vrot.slane %v685_v13, 2  ;;  %v714_v60 = vrot.slane %v713_v15, 2  ;;  %v742_v6 = vrot.slane %v741_v21, 2 }
  0x30   :  { %v602_v47 = vrot.slane %v601_v61, 2  ;;  %v575_v63 = vadd.f32 %v574_v52, %v573_v56  ;;  %v631_v1 = vadd.f32 %v630_v38, %v629_v3  ;;  %v659_v9 = vadd.f32 %v658_v2, %v657_v7  ;;  %v2505_v56 = vld [vmem:[%s3332_s0 + $0x8] sm:$0xff] }
  0x31   :  { %v770_v8 = vrot.slane %v769_v40, 2  ;;  %v687_v19 = vadd.f32 %v686_v58, %v685_v13  ;;  %v715_v54 = vadd.f32 %v714_v60, %v713_v15  ;;  %v743_v0 = vadd.f32 %v742_v6, %v741_v21  ;;  %3420 = vst [vmem:[#allocation22_spill] sm:$0xff] %v2505_v56  ;;  %v2510_v6 = vld [vmem:[%s3332_s0 + $0x18] sm:$0xff]  ;;  %v2515_v21 = vld [vmem:[%s3332_s0 + $0x28] sm:$0xff] }
  0x32   :  { %v603_v59 = vadd.f32 %v602_v47, %v601_v61  ;;  %v576_v12 = vrot.slane %v575_v63, 1  ;;  %v632_v39 = vrot.slane %v631_v1, 1  ;;  %v660_v41 = vrot.slane %v659_v9, 1  ;;  %3421 = vst [vmem:[#allocation23_spill] sm:$0xff] %v2510_v6  ;;  %3422 = vst [vmem:[#allocation24_spill] sm:$0xff] %v2515_v21  ;;  %v2524_v47 = vld [vmem:[%s3332_s0 + $0x38] sm:$0xff] }
  0x33   :  { %v771_v45 = vadd.f32 %v770_v8, %v769_v40  ;;  %v688_v53 = vrot.slane %v687_v19, 1  ;;  %v716_v55 = vrot.slane %v715_v54, 1  ;;  %v744_v62 = vrot.slane %v743_v0, 1  ;;  %3423 = vst [vmem:[#allocation25_spill] sm:$0xff] %v2524_v47 }
  0x34   :  { %v604_v14 = vrot.slane %v603_v59, 1  ;;  %v577_v61 = vadd.f32 %v576_v12, %v575_v63  ;;  %v633_v58 = vadd.f32 %v632_v39, %v631_v1  ;;  %v661_v60 = vadd.f32 %v660_v41, %v659_v9  ;;  %v2694_v39 = vld [vmem:[%s3332_s0 + $0x1a8] sm:$0xff] }
  0x35   :  { %v772_v57 = vrot.slane %v771_v45, 1  ;;  %v689_v8 = vadd.f32 %v688_v53, %v687_v19  ;;  %v717_v7 = vadd.f32 %v716_v55, %v715_v54  ;;  %v745_v13 = vadd.f32 %v744_v62, %v743_v0  ;;  %v2569_v55 = vld [vmem:[%s3332_s0 + $0x88] sm:$0xff]  ;;  %v2675_v54 = vld [vmem:[%s3332_s0 + $0x178] sm:$0xff]  ;;  %3438 = vst [vmem:[#allocation40_spill] sm:$0xff] %v2694_v39 }
  0x36   :  { %v605_v3 = vadd.f32 %v604_v14, %v603_v59  ;;  %v1122_v40 = vsel %vm1108_vm0, %v2456_v48, %v2454_v46  ;;  %v2534_v46 = vld [vmem:[%s3332_s0 + $0x48] sm:$0xff]  ;;  %3428 = vst [vmem:[#allocation30_spill] sm:$0xff] %v2569_v55  ;;  %v3444_v2 = vunpack.c.h.bf16 %v2505_v56  ;;  %v3445_v0 = vunpack.c.h.bf16 %v2510_v6 }
  0x37   :  { %v773_v15 = vadd.f32 %v772_v57, %v771_v45  ;;  %v1123_v63 = vsel %vm1110_vm1, %v2458_v24, %v1122_v40  ;;  %3424 = vst [vmem:[#allocation26_spill] sm:$0xff] %v2534_v46  ;;  %v2544_v24 = vld [vmem:[%s3332_s0 + $0x58] sm:$0xff]  ;;  %v2599_v40 = vld [vmem:[%s3332_s0 + $0xc8] sm:$0xff]  ;;  %v3447_v18 = vunpack.c.h.bf16 %v2524_v47  ;;  %v3452_v56 = vunpack.c.h.bf16 %v2569_v55 }
  0x38   :  { %v1150_v52 = vsel %vm1108_vm0, %v605_v3, %v577_v61  ;;  %v1124_v9 = vsel %vm1112_vm2, %v2460_v26, %v1123_v63  ;;  %3425 = vst [vmem:[#allocation27_spill] sm:$0xff] %v2544_v24  ;;  %v2554_v26 = vld [vmem:[%s3332_s0 + $0x68] sm:$0xff]  ;;  %v2579_v3 = vld [vmem:[%s3332_s0 + $0x98] sm:$0xff]  ;;  %3432 = vst [vmem:[#allocation34_spill] sm:$0xff] %v2599_v40  ;;  %v199_v62 = vunpack.c.h.bf16 %v2599_v40  ;;  %v361_v29 = vadd.f32 %v3445_v0, %v3444_v2 }
  0x39   :  { %v1151_v59 = vsel %vm1110_vm1, %v633_v58, %v1150_v52  ;;  %v1125_v45 = vsel %vm1114_vm3, %v2462_v30, %v1124_v9  ;;  %3426 = vst [vmem:[#allocation28_spill] sm:$0xff] %v2554_v26  ;;  %v2564_v30 = vld [vmem:[%s3332_s0 + $0x78] sm:$0xff]  ;;  %3429 = vst [vmem:[#allocation31_spill] sm:$0xff] %v2579_v3  ;;  %v2584_v58 = vld [vmem:[%s3332_s0 + $0xa8] sm:$0xff]  ;;  %v3446_v63 = vunpack.c.h.bf16 %v2515_v21  ;;  %v3449_v40 = vunpack.c.h.bf16 %v2544_v24 }
  0x3a   :  { %v1152_v19 = vsel %vm1112_vm2, %v661_v60, %v1151_v59  ;;  %v1126_v41 = vsel %vm1116_vm4, %v2464_v27, %v1125_v45  ;;  %3427 = vst [vmem:[#allocation29_spill] sm:$0xff] %v2564_v30  ;;  %3430 = vst [vmem:[#allocation32_spill] sm:$0xff] %v2584_v58  ;;  %v2638_v45 = vld [vmem:[%s3332_s0 + $0x128] sm:$0xff]  ;;  %v191_v9 = vunpack.c.h.bf16 %v2584_v58  ;;  %v2661_v60 = vld [vmem:[%s3332_s0 + $0x158] sm:$0xff]  ;;  %v3451_v58 = vunpack.c.h.bf16 %v2564_v30 }
  0x3b   :  { %v1153_v12 = vsel %vm1114_vm3, %v689_v8, %v1152_v19  ;;  %v1127_v61 = vsel %vm1118_vm5, %v2466_v25, %v1126_v41  ;;  %v2624_v41 = vld [vmem:[%s3332_s0 + $0x108] sm:$0xff]  ;;  %v2703_v57 = vld [vmem:[%s3332_s0 + $0x1b8] sm:$0xff]  ;;  %v389_v20 = vadd.f32 %v3447_v18, %v3446_v63  ;;  %v3453_v6 = vunpack.c.h.bf16 %v2579_v3 }
  0x3c   :  { %v1154_v53 = vsel %vm1116_vm4, %v717_v7, %v1153_v12  ;;  %v1128_v7 = vsel %vm1120_vm6, %v2468_v31, %v1127_v61  ;;  %v2606_v31 = vld [vmem:[%s3332_s0 + $0xd8] sm:$0xff]  ;;  %v2666_v48 = vld [vmem:[%s3332_s0 + $0x168] sm:$0xff]  ;;  %3439 = vst [vmem:[#allocation41_spill] sm:$0xff] %v2703_v57  ;;  %v362_v0 = vrot.slane %v361_v29, 4 }
  0x3d   :  { %v1155_v27 = vsel %vm1118_vm5, %v745_v13, %v1154_v53  ;;  %v2594_v13 = vld [vmem:[%s3332_s0 + $0xb8] sm:$0xff]  ;;  %3433 = vst [vmem:[#allocation35_spill] sm:$0xff] %v2606_v31  ;;  %v203_v52 = vunpack.c.h.bf16 %v2606_v31  ;;  %v2680_v19 = vld [vmem:[%s3332_s0 + $0x188] sm:$0xff]  ;;  %v3448_v31 = vunpack.c.h.bf16 %v2534_v46  ;;  %v473_v2 = vadd.f32 %v3453_v6, %v3452_v56 }
  0x3e   :  { %v1156_v25 = vsel %vm1120_vm6, %v773_v15, %v1155_v27  ;;  %3431 = vst [vmem:[#allocation33_spill] sm:$0xff] %v2594_v13  ;;  %v2611_v15 = vld [vmem:[%s3332_s0 + $0xe8] sm:$0xff]  ;;  %v2619_v12 = vld [vmem:[%s3332_s0 + $0xf8] sm:$0xff]  ;;  %v195_v61 = vunpack.c.h.bf16 %v2594_v13  ;;  %3436 = vst [vmem:[#allocation38_spill] sm:$0xff] %v2680_v19  ;;  %v3450_v13 = vunpack.c.h.bf16 %v2554_v26  ;;  %v390_v18 = vrot.slane %v389_v20, 4 }
  0x3f   :  { %v1251_v59 = vpack.c.bf16 %v1156_v25, %v1128_v7  ;;  %3434 = vst [vmem:[#allocation36_spill] sm:$0xff] %v2611_v15  ;;  %3435 = vst [vmem:[#allocation37_spill] sm:$0xff] %v2619_v12  ;;  %v2633_v25 = vld [vmem:[%s3332_s0 + $0x118] sm:$0xff]  ;;  %v2652_v7 = vld [vmem:[%s3332_s0 + $0x148] sm:$0xff]  ;;  %v207_v38 = vunpack.c.h.bf16 %v2611_v15  ;;  %v211_v14 = vunpack.c.h.bf16 %v2619_v12  ;;  %v417_v28 = vadd.f32 %v3449_v40, %v3448_v31 }
  0x40   :  { %v2689_v53 = vld [vmem:[%s3332_s0 + $0x198] sm:$0xff]  ;;  %v2708_v1 = vld [vmem:[%s3332_s0 + $0x1c8] sm:$0xff]  ;;  %v445_v15 = vadd.f32 %v3451_v58, %v3450_v13  ;;  %v501_v21 = vadd.f32 %v195_v61, %v191_v9  ;;  %v529_v23 = vadd.f32 %v203_v52, %v199_v62  ;;  %v474_v22 = vrot.slane %v473_v2, 4 }
  0x41   :  { %1553 = vmatprep.mubr.bf16.mxu0 %v1251_v59  ;;  %v2647_v59 = vld [vmem:[%s3332_s0 + $0x138] sm:$0xff]  ;;  %3437 = vst [vmem:[#allocation39_spill] sm:$0xff] %v2689_v53  ;;  %3440 = vst [vmem:[#allocation42_spill] sm:$0xff] %v2708_v1  ;;  %v2722_v12 = vld [vmem:[%s3332_s0 + $0x1e8] sm:$0xff]  ;;  %v557_v47 = vadd.f32 %v211_v14, %v207_v38  ;;  %v418_v63 = vrot.slane %v417_v28, 4  ;;  %v363_v24 = vadd.f32 %v362_v0, %v361_v29 }
  0x42   :  { %v2717_v27 = vld [vmem:[%s3332_s0 + $0x1d8] sm:$0xff]  ;;  %3442 = vst [vmem:[#allocation44_spill] sm:$0xff] %v2722_v12  ;;  %v446_v46 = vrot.slane %v445_v15, 4  ;;  %v502_v40 = vrot.slane %v501_v21, 4  ;;  %v530_v31 = vrot.slane %v529_v23, 4  ;;  %v391_v17 = vadd.f32 %v390_v18, %v389_v20 }
  0x43   :  { %3441 = vst [vmem:[#allocation43_spill] sm:$0xff] %v2717_v27  ;;  %v2731_v8 = vld [vmem:[%s3332_s0 + $0x1f8] sm:$0xff]  ;;  %v558_v26 = vrot.slane %v557_v47, 4  ;;  %v419_v30 = vadd.f32 %v418_v63, %v417_v28  ;;  %v475_v13 = vadd.f32 %v474_v22, %v473_v2  ;;  %v364_v55 = vrot.slane %v363_v24, 2 }
  0x44   :  { %3443 = vst [vmem:[#allocation45_spill] sm:$0xff] %v2731_v8  ;;  %v447_v58 = vadd.f32 %v446_v46, %v445_v15  ;;  %v503_v16 = vadd.f32 %v502_v40, %v501_v21  ;;  %v531_v3 = vadd.f32 %v530_v31, %v529_v23  ;;  %v392_v6 = vrot.slane %v391_v17, 2 }
  0x45   :  { %v559_v56 = vadd.f32 %v558_v26, %v557_v47  ;;  %v420_v9 = vrot.slane %v419_v30, 2  ;;  %v476_v38 = vrot.slane %v475_v13, 2  ;;  %v365_v14 = vadd.f32 %v364_v55, %v363_v24 }
  0x46   :  { %v448_v62 = vrot.slane %v447_v58, 2  ;;  %v504_v52 = vrot.slane %v503_v16, 2  ;;  %v532_v61 = vrot.slane %v531_v3, 2  ;;  %v393_v29 = vadd.f32 %v392_v6, %v391_v17 }
  0x47   :  { %v560_v11 = vrot.slane %v559_v56, 2  ;;  %v421_v0 = vadd.f32 %v420_v9, %v419_v30  ;;  %v477_v5 = vadd.f32 %v476_v38, %v475_v13  ;;  %v366_v20 = vrot.slane %v365_v14, 1 }
  0x48   :  { %v449_v10 = vadd.f32 %v448_v62, %v447_v58  ;;  %v505_v28 = vadd.f32 %v504_v52, %v503_v16  ;;  %v533_v46 = vadd.f32 %v532_v61, %v531_v3  ;;  %v394_v15 = vrot.slane %v393_v29, 1 }
  0x49   :  { %v561_v22 = vadd.f32 %v560_v11, %v559_v56  ;;  %v422_v21 = vrot.slane %v421_v0, 1  ;;  %v478_v47 = vrot.slane %v477_v5, 1  ;;  %v2768_v26 = vadd.f32 %v366_v20, %v365_v14 }
  0x4a   :  { %v450_v23 = vrot.slane %v449_v10, 1  ;;  %v506_v2 = vrot.slane %v505_v28, 1  ;;  %v534_v18 = vrot.slane %v533_v46, 1  ;;  %v2770_v55 = vadd.f32 %v394_v15, %v393_v29 }
  0x4b   :  { %v562_v24 = vrot.slane %v561_v22, 1  ;;  %v2772_v63 = vadd.f32 %v422_v21, %v421_v0  ;;  %v2776_v30 = vadd.f32 %v478_v47, %v477_v5  ;;  %v3454_v40 = vunpack.c.h.bf16 %v2624_v41 }
  0x4c   :  { %v2774_v17 = vadd.f32 %v450_v23, %v449_v10  ;;  %v2778_v16 = vadd.f32 %v506_v2, %v505_v28  ;;  %v2780_v11 = vadd.f32 %v534_v18, %v533_v46  ;;  %v3455_v31 = vunpack.c.h.bf16 %v2633_v25 }
  0x4d   :  { %v2782_v3 = vadd.f32 %v562_v24, %v561_v22  ;;  %v3456_v13 = vunpack.c.h.bf16 %v2638_v45  ;;  %v3457_v56 = vunpack.c.h.bf16 %v2647_v59  ;;  %v3458_v10 = vunpack.c.h.bf16 %v2652_v7 }
  0x4e   :  { %v585_v58 = vadd.f32 %v3455_v31, %v3454_v40  ;;  %v3459_v5 = vunpack.c.h.bf16 %v2661_v60  ;;  %v3460_v62 = vunpack.c.h.bf16 %v2666_v48  ;;  %v3461_v38 = vunpack.c.h.bf16 %v2675_v54 }
  0x4f   :  { %v613_v6 = vadd.f32 %v3457_v56, %v3456_v13  ;;  %v3462_v52 = vunpack.c.h.bf16 %v2680_v19  ;;  %v3463_v61 = vunpack.c.h.bf16 %v2689_v53  ;;  %v3464_v20 = vunpack.c.h.bf16 %v2694_v39 }
  0x50   :  { %v641_v9 = vadd.f32 %v3459_v5, %v3458_v10  ;;  %v669_v14 = vadd.f32 %v3461_v38, %v3460_v62  ;;  %v586_v0 = vrot.slane %v585_v58, 4  ;;  %v3465_v28 = vunpack.c.h.bf16 %v2703_v57 }
  0x51   :  { %v697_v29 = vadd.f32 %v3463_v61, %v3462_v52  ;;  %v3466_v22 = vunpack.c.h.bf16 %v2708_v1  ;;  %v3467_v15 = vunpack.c.h.bf16 %v2717_v27  ;;  %v3468_v23 = vunpack.c.h.bf16 %v2722_v12 }
  0x52   :  { %v725_v46 = vadd.f32 %v3465_v28, %v3464_v20  ;;  %v3469_v47 = vunpack.c.h.bf16 %v2731_v8  ;;  %v614_v18 = vrot.slane %v613_v6, 4  ;;  %v642_v24 = vrot.slane %v641_v9, 4 }
  0x53   :  { %v753_v21 = vadd.f32 %v3467_v15, %v3466_v22  ;;  %v670_v40 = vrot.slane %v669_v14, 4  ;;  %v698_v31 = vrot.slane %v697_v29, 4  ;;  %v587_v13 = vadd.f32 %v586_v0, %v585_v58 }
  0x54   :  { %v781_v2 = vadd.f32 %v3469_v47, %v3468_v23  ;;  %v726_v56 = vrot.slane %v725_v46, 4  ;;  %v615_v62 = vadd.f32 %v614_v18, %v613_v6  ;;  %v643_v38 = vadd.f32 %v642_v24, %v641_v9 }
  0x55   :  { %v754_v10 = vrot.slane %v753_v21, 4  ;;  %v671_v52 = vadd.f32 %v670_v40, %v669_v14  ;;  %v699_v61 = vadd.f32 %v698_v31, %v697_v29  ;;  %v588_v20 = vrot.slane %v587_v13, 2 }
  0x56   :  { %v782_v5 = vrot.slane %v781_v2, 4  ;;  %v727_v28 = vadd.f32 %v726_v56, %v725_v46  ;;  %v616_v12 = vrot.slane %v615_v62, 2  ;;  %v644_v27 = vrot.slane %v643_v38, 2 }
  0x57   :  { %v755_v22 = vadd.f32 %v754_v10, %v753_v21  ;;  %v672_v8 = vrot.slane %v671_v52, 2  ;;  %v700_v23 = vrot.slane %v699_v61, 2  ;;  %v589_v47 = vadd.f32 %v588_v20, %v587_v13 }
  0x58   :  { %v783_v15 = vadd.f32 %v782_v5, %v781_v2  ;;  %v728_v1 = vrot.slane %v727_v28, 2  ;;  %v617_v58 = vadd.f32 %v616_v12, %v615_v62  ;;  %v645_v0 = vadd.f32 %v644_v27, %v643_v38 }
  0x59   :  { %v756_v57 = vrot.slane %v755_v22, 2  ;;  %v673_v53 = vadd.f32 %v672_v8, %v671_v52  ;;  %v701_v19 = vadd.f32 %v700_v23, %v699_v61  ;;  %v590_v6 = vrot.slane %v589_v47, 1 }
  0x5a   :  { %v784_v39 = vrot.slane %v783_v15, 2  ;;  %v729_v9 = vadd.f32 %v728_v1, %v727_v28  ;;  %v618_v18 = vrot.slane %v617_v58, 1  ;;  %v646_v46 = vrot.slane %v645_v0, 1 }
  0x5b   :  { %v757_v14 = vadd.f32 %v756_v57, %v755_v22  ;;  %v674_v21 = vrot.slane %v673_v53, 1  ;;  %v702_v2 = vrot.slane %v701_v19, 1  ;;  %v591_v24 = vadd.f32 %v590_v6, %v589_v47 }
  0x5c   :  { %v785_v29 = vadd.f32 %v784_v39, %v783_v15  ;;  %v730_v40 = vrot.slane %v729_v9, 1  ;;  %v619_v13 = vadd.f32 %v618_v18, %v617_v58  ;;  %v647_v10 = vadd.f32 %v646_v46, %v645_v0 }
  0x5d   :  { %v758_v31 = vrot.slane %v757_v14, 1  ;;  %v675_v5 = vadd.f32 %v674_v21, %v673_v53  ;;  %v703_v20 = vadd.f32 %v702_v2, %v701_v19  ;;  %v1136_v1 = vsel %vm1108_vm0, %v2770_v55, %v2768_v26 }
  0x5e   :  { %v786_v56 = vrot.slane %v785_v29, 1  ;;  %v731_v12 = vadd.f32 %v730_v40, %v729_v9  ;;  %v1137_v39 = vsel %vm1110_vm1, %v2772_v63, %v1136_v1  ;;  %v1164_v57 = vsel %vm1108_vm0, %v619_v13, %v591_v24 }
  0x5f   :  { %v759_v27 = vadd.f32 %v758_v31, %v757_v14  ;;  %v3470_v62 = vunpack.c.l.bf16 %v2213_v32  ;;  %v3471_v38 = vunpack.c.l.bf16 %v2218_v33  ;;  %v3472_v53 = vunpack.c.l.bf16 %v2223_v34 }
  0x60   :  { %v787_v8 = vadd.f32 %v786_v56, %v785_v29  ;;  %v3473_v19 = vunpack.c.l.bf16 %v2228_v35  ;;  %v1138_v28 = vsel %vm1112_vm2, %v2774_v17, %v1137_v39  ;;  %v1165_v26 = vsel %vm1110_vm1, %v647_v10, %v1164_v57 }
  0x61   :  { %v340_v52 = vadd.f32 %v3471_v38, %v3470_v62  ;;  %v3474_v55 = vunpack.c.l.bf16 %v2233_v36  ;;  %v3475_v63 = vunpack.c.l.bf16 %v2238_v37  ;;  %v3476_v32 = vunpack.c.l.bf16 %v2247_v42  ;;  %v3486_v62 = vld [vmem:[#allocation5_spill] sm:$0xff] }
  0x62   :  { %v368_v61 = vadd.f32 %v3473_v19, %v3472_v53  ;;  %v3477_v33 = vunpack.c.l.bf16 %v2252_v43  ;;  %v1139_v34 = vsel %vm1114_vm3, %v2776_v30, %v1138_v28  ;;  %v1166_v35 = vsel %vm1112_vm2, %v675_v5, %v1165_v26 }
  0x63   :  { %v396_v22 = vadd.f32 %v3475_v63, %v3474_v55  ;;  %v341_v23 = vrot.slane %v340_v52, 4  ;;  %v1140_v17 = vsel %vm1116_vm4, %v2778_v16, %v1139_v34  ;;  %v1167_v36 = vsel %vm1114_vm3, %v703_v20, %v1166_v35 }
  0x64   :  { %v424_v15 = vadd.f32 %v3477_v33, %v3476_v32  ;;  %v369_v47 = vrot.slane %v368_v61, 4  ;;  %v1141_v42 = vsel %vm1118_vm5, %v2780_v11, %v1140_v17  ;;  %v1168_v43 = vsel %vm1116_vm4, %v731_v12, %v1167_v36  ;;  %v3482_v12 = vld [vmem:[#allocation3_spill] sm:$0xff] }
  0x65   :  { %v397_v58 = vrot.slane %v396_v22, 4  ;;  %v342_v0 = vadd.f32 %v341_v23, %v340_v52  ;;  %v1142_v30 = vsel %vm1120_vm6, %v2782_v3, %v1141_v42  ;;  %v1169_v9 = vsel %vm1118_vm5, %v759_v27, %v1168_v43  ;;  %v3488_v52 = vld [vmem:[#allocation6_spill] sm:$0xff]  ;;  %v3491_v42 = vld [vmem:[#allocation7_spill] sm:$0xff] }
  0x66   :  { %v425_v37 = vrot.slane %v424_v15, 4  ;;  %v370_v6 = vadd.f32 %v369_v47, %v368_v61  ;;  %v1170_v16 = vsel %vm1120_vm6, %v787_v8, %v1169_v9  ;;  %v3478_v21 = vunpack.c.l.bf16 %v2257_v44  ;;  %v3484_v8 = vld [vmem:[#allocation4_spill] sm:$0xff]  ;;  %v3495_v9 = vld [vmem:[#allocation9_spill] sm:$0xff] }
  0x67   :  { %v398_v14 = vadd.f32 %v397_v58, %v396_v22  ;;  %v343_v18 = vrot.slane %v342_v0, 2  ;;  %v3479_v2 = vunpack.c.l.bf16 %v2266_v49  ;;  %v1253_v24 = vpack.c.bf16 %v1170_v16, %v1142_v30 }
  0x68   :  { %v426_v29 = vadd.f32 %v425_v37, %v424_v15  ;;  %v371_v46 = vrot.slane %v370_v6, 2  ;;  %v3480_v56 = vunpack.c.l.bf16 %v2271_v50  ;;  %v3481_v3 = vunpack.c.l.bf16 %v2276_v51 }
  0x69   :  { %v452_v11 = vadd.f32 %v3479_v2, %v3478_v21  ;;  %v399_v40 = vrot.slane %v398_v14, 2  ;;  %v344_v10 = vadd.f32 %v343_v18, %v342_v0  ;;  %v3483_v27 = vunpack.c.l.bf16 %v3482_v12  ;;  %1601 = vmatprep.mubr.bf16.mxu1 %v1253_v24  ;;  %v3499_v2 = vld [vmem:[#allocation11_spill] sm:$0xff] }
  0x6a   :  { %v427_v31 = vrot.slane %v426_v29, 2  ;;  %v480_v13 = vadd.f32 %v3481_v3, %v3480_v56  ;;  %v372_v5 = vadd.f32 %v371_v46, %v370_v6  ;;  %v3485_v1 = vunpack.c.l.bf16 %v3484_v8  ;;  %v3493_v6 = vld [vmem:[#allocation8_spill] sm:$0xff]  ;;  %v3497_v46 = vld [vmem:[#allocation10_spill] sm:$0xff]  ;;  %v3503_v56 = vld [vmem:[#allocation13_spill] sm:$0xff] }
  0x6b   :  { %v453_v20 = vrot.slane %v452_v11, 4  ;;  %v400_v44 = vadd.f32 %v399_v40, %v398_v14  ;;  %v3487_v38 = vunpack.c.l.bf16 %v3486_v62  ;;  %v3489_v53 = vunpack.c.l.bf16 %v3488_v52  ;;  %v3501_v40 = vld [vmem:[#allocation12_spill] sm:$0xff] }
  0x6c   :  { %v508_v39 = vadd.f32 %v3485_v1, %v3483_v27  ;;  %v428_v49 = vadd.f32 %v427_v31, %v426_v29  ;;  %v481_v57 = vrot.slane %v480_v13, 4  ;;  %v345_v19 = vrot.slane %v344_v10, 1 }
  0x6d   :  { %v536_v50 = vadd.f32 %v3489_v53, %v3487_v38  ;;  %v373_v51 = vrot.slane %v372_v5, 1  ;;  %v454_v61 = vadd.f32 %v453_v20, %v452_v11  ;;  %v401_v26 = vrot.slane %v400_v44, 1 }
  0x6e   :  { %v509_v28 = vrot.slane %v508_v39, 4  ;;  %v429_v55 = vrot.slane %v428_v49, 1  ;;  %v482_v63 = vadd.f32 %v481_v57, %v480_v13  ;;  %v2870_v32 = vadd.f32 %v345_v19, %v344_v10 }
  0x6f   :  { %v537_v22 = vrot.slane %v536_v50, 4  ;;  %v2872_v33 = vadd.f32 %v373_v51, %v372_v5  ;;  %v455_v15 = vrot.slane %v454_v61, 2  ;;  %v2874_v35 = vadd.f32 %v401_v26, %v400_v44  ;;  %v3507_v26 = vld [vmem:[#allocation15_spill] sm:$0xff] }
  0x70   :  { %v510_v34 = vadd.f32 %v509_v28, %v508_v39  ;;  %v2876_v23 = vadd.f32 %v429_v55, %v428_v49  ;;  %v483_v47 = vrot.slane %v482_v63, 2  ;;  %v3490_v37 = vunpack.c.l.bf16 %v2313_v4 }
  0x71   :  { %v538_v17 = vadd.f32 %v537_v22, %v536_v50  ;;  %v456_v36 = vadd.f32 %v455_v15, %v454_v61  ;;  %v3492_v43 = vunpack.c.l.bf16 %v3491_v42  ;;  %v3494_v30 = vunpack.c.l.bf16 %v3493_v6  ;;  %v3505_v61 = vld [vmem:[#allocation14_spill] sm:$0xff] }
  0x72   :  { %v511_v58 = vrot.slane %v510_v34, 2  ;;  %v3496_v14 = vunpack.c.l.bf16 %v3495_v9  ;;  %v484_v16 = vadd.f32 %v483_v47, %v482_v63  ;;  %v3498_v21 = vunpack.c.l.bf16 %v3497_v46  ;;  %v3509_v47 = vld [vmem:[#allocation16_spill] sm:$0xff]  ;;  %v3513_v6 = vld [vmem:[#allocation18_spill] sm:$0xff]  ;;  %v3515_v9 = vld [vmem:[#allocation19_spill] sm:$0xff] }
  0x73   :  { %v564_v0 = vadd.f32 %v3492_v43, %v3490_v37  ;;  %v539_v18 = vrot.slane %v538_v17, 2  ;;  %v3500_v11 = vunpack.c.l.bf16 %v3499_v2  ;;  %v3502_v31 = vunpack.c.l.bf16 %v3501_v40 }
  0x74   :  { %v592_v29 = vadd.f32 %v3496_v14, %v3494_v30  ;;  %v3504_v3 = vunpack.c.l.bf16 %v3503_v56  ;;  %v457_v13 = vrot.slane %v456_v36, 1  ;;  %v512_v10 = vadd.f32 %v511_v58, %v510_v34 }
  0x75   :  { %v620_v24 = vadd.f32 %v3500_v11, %v3498_v21  ;;  %v565_v5 = vrot.slane %v564_v0, 4  ;;  %v485_v12 = vrot.slane %v484_v16, 1  ;;  %v540_v27 = vadd.f32 %v539_v18, %v538_v17  ;;  %v3517_v21 = vld [vmem:[#allocation20_spill] sm:$0xff]  ;;  %v3519_v11 = vld [vmem:[#allocation21_spill] sm:$0xff] }
  0x76   :  { %v648_v4 = vadd.f32 %v3504_v3, %v3502_v31  ;;  %v593_v20 = vrot.slane %v592_v29, 4  ;;  %v458_v39 = vadd.f32 %v457_v13, %v456_v36  ;;  %v513_v44 = vrot.slane %v512_v10, 1  ;;  %v3511_v36 = vld [vmem:[#allocation17_spill] sm:$0xff] }
  0x77   :  { %v621_v8 = vrot.slane %v620_v24, 4  ;;  %v566_v49 = vadd.f32 %v565_v5, %v564_v0  ;;  %v486_v62 = vadd.f32 %v485_v12, %v484_v16  ;;  %v541_v38 = vrot.slane %v540_v27, 1 }
  0x78   :  { %v649_v1 = vrot.slane %v648_v4, 4  ;;  %v594_v57 = vadd.f32 %v593_v20, %v592_v29  ;;  %v514_v50 = vadd.f32 %v513_v44, %v512_v10  ;;  %v3506_v28 = vunpack.c.l.bf16 %v3505_v61  ;;  %v2913_v44 = vld [vmem:[%s3333_s2] sm:$0xff]  }
  0x79   :  { %v622_v52 = vadd.f32 %v621_v8, %v620_v24  ;;  %v567_v19 = vrot.slane %v566_v49, 2  ;;  %v3508_v55 = vunpack.c.l.bf16 %v3507_v26  ;;  %v542_v22 = vadd.f32 %v541_v38, %v540_v27  ;;  %1991 = vmatprep.subr.bf16.mxu0 %v2913_v44 }
  0x7a   :  { %v650_v53 = vadd.f32 %v649_v1, %v648_v4  ;;  %v595_v51 = vrot.slane %v594_v57, 2  ;;  %v3510_v17 = vunpack.c.l.bf16 %v3509_v47  ;;  %v3512_v58 = vunpack.c.l.bf16 %v3511_v36 }
  0x7b   :  { %v676_v63 = vadd.f32 %v3508_v55, %v3506_v28  ;;  %v623_v15 = vrot.slane %v622_v52, 2  ;;  %v568_v42 = vadd.f32 %v567_v19, %v566_v49  ;;  %v3514_v30 = vunpack.c.l.bf16 %v3513_v6 }
  0x7c   :  { %v651_v34 = vrot.slane %v650_v53, 2  ;;  %v704_v37 = vadd.f32 %v3512_v58, %v3510_v17  ;;  %v596_v43 = vadd.f32 %v595_v51, %v594_v57  ;;  %v3516_v14 = vunpack.c.l.bf16 %v3515_v9  ;;  %v3521_v58 = vld [vmem:[#allocation22_spill] sm:$0xff]  ;;  %v3525_v9 = vld [vmem:[#allocation24_spill] sm:$0xff] }
  0x7d   :  { %v677_v0 = vrot.slane %v676_v63, 4  ;;  %v624_v16 = vadd.f32 %v623_v15, %v622_v52  ;;  %v3518_v2 = vunpack.c.l.bf16 %v3517_v21  ;;  %v3520_v24 = vunpack.c.l.bf16 %v3519_v11 }
  0x7e   :  { %v732_v29 = vadd.f32 %v3516_v14, %v3514_v30  ;;  %v652_v18 = vadd.f32 %v651_v34, %v650_v53  ;;  %v705_v46 = vrot.slane %v704_v37, 4  ;;  %v569_v31 = vrot.slane %v568_v42, 1 }
  0x7f   :  { %v760_v40 = vadd.f32 %v3520_v24, %v3518_v2  ;;  %v597_v56 = vrot.slane %v596_v43, 1  ;;  %v678_v3 = vadd.f32 %v677_v0, %v676_v63  ;;  %v625_v13 = vrot.slane %v624_v16, 1 }
  0x80   :  { %v733_v4 = vrot.slane %v732_v29, 4  ;;  %v653_v10 = vrot.slane %v652_v18, 1  ;;  %v706_v5 = vadd.f32 %v705_v46, %v704_v37  ;;  %v570_v12 = vadd.f32 %v569_v31, %v568_v42  ;;  %v3523_v42 = vld [vmem:[#allocation23_spill] sm:$0xff] }
  0x81   :  { %v761_v20 = vrot.slane %v760_v40, 4  ;;  %v598_v27 = vadd.f32 %v597_v56, %v596_v43  ;;  %v679_v8 = vrot.slane %v678_v3, 2  ;;  %v626_v49 = vadd.f32 %v625_v13, %v624_v16  ;;  %v3531_v13 = vld [vmem:[#allocation27_spill] sm:$0xff] }
  0x82   :  { %v734_v1 = vadd.f32 %v733_v4, %v732_v29  ;;  %v654_v57 = vadd.f32 %v653_v10, %v652_v18  ;;  %v707_v38 = vrot.slane %v706_v5, 2  ;;  %v1109_v51 = vsel %vm1108_vm0, %v2872_v33, %v2870_v32  ;;  %v3527_v29 = vld [vmem:[#allocation25_spill] sm:$0xff] }
  0x83   :  { %v762_v52 = vadd.f32 %v761_v20, %v760_v40  ;;  %v680_v53 = vadd.f32 %v679_v8, %v678_v3  ;;  %v1143_v61 = vsel %vm1108_vm0, %v598_v27, %v570_v12  ;;  %v1111_v55 = vsel %vm1110_vm1, %v2874_v35, %v1109_v51  ;;  %v3529_v3 = vld [vmem:[#allocation26_spill] sm:$0xff]  ;;  %v3535_v8 = vld [vmem:[#allocation29_spill] sm:$0xff] }
  0x84   :  { %v735_v19 = vrot.slane %v734_v1, 2  ;;  %v708_v28 = vadd.f32 %v707_v38, %v706_v5  ;;  %v1144_v63 = vsel %vm1110_vm1, %v626_v49, %v1143_v61  ;;  %v1113_v47 = vsel %vm1112_vm2, %v2876_v23, %v1111_v55  ;;  %v3537_v49 = vld [vmem:[#allocation30_spill] sm:$0xff]  ;;  %v3539_v38 = vld [vmem:[#allocation31_spill] sm:$0xff]  ;;  %v3543_v55 = vld [vmem:[#allocation33_spill] sm:$0xff] }
  0x85   :  { %v763_v26 = vrot.slane %v762_v52, 2  ;;  %v681_v15 = vrot.slane %v680_v53, 1  ;;  %v1145_v17 = vsel %vm1112_vm2, %v654_v57, %v1144_v63  ;;  %v1115_v33 = vsel %vm1114_vm3, %v458_v39, %v1113_v47 }
  0x86   :  { %v736_v34 = vadd.f32 %v735_v19, %v734_v1  ;;  %v709_v36 = vrot.slane %v708_v28, 1  ;;  %v3522_v37 = vunpack.c.l.bf16 %v3521_v58  ;;  %v3524_v43 = vunpack.c.l.bf16 %v3523_v42  ;;  %v3545_v42 = vld [vmem:[#allocation34_spill] sm:$0xff] }
  0x87   :  { %v764_v32 = vadd.f32 %v763_v26, %v762_v52  ;;  %v682_v6 = vadd.f32 %v681_v15, %v680_v53  ;;  %v1117_v30 = vsel %vm1116_vm4, %v486_v62, %v1115_v33  ;;  %v3526_v14 = vunpack.c.l.bf16 %v3525_v9 }
  0x88   :  { %v354_v0 = vadd.f32 %v3524_v43, %v3522_v37  ;;  %v737_v35 = vrot.slane %v736_v34, 1  ;;  %v3528_v16 = vunpack.c.l.bf16 %v3527_v29  ;;  %v710_v18 = vadd.f32 %v709_v36, %v708_v28  ;;  %v3541_v28 = vld [vmem:[#allocation32_spill] sm:$0xff] }
  0x89   :  { %v765_v46 = vrot.slane %v764_v32, 1  ;;  %v1119_v21 = vsel %vm1118_vm5, %v514_v50, %v1117_v30  ;;  %v1146_v24 = vsel %vm1114_vm3, %v682_v6, %v1145_v17  ;;  %v3530_v4 = vunpack.c.l.bf16 %v3529_v3  ;;  %v3533_v50 = vld [vmem:[#allocation28_spill] sm:$0xff] }
  0x8a   :  { %v382_v23 = vadd.f32 %v3528_v16, %v3526_v14  ;;  %v355_v2 = vrot.slane %v354_v0, 4  ;;  %v738_v39 = vadd.f32 %v737_v35, %v736_v34  ;;  %v1121_v11 = vsel %vm1120_vm6, %v542_v22, %v1119_v21  ;;  %v3549_v29 = vld [vmem:[#allocation36_spill] sm:$0xff] }
  0x8b   :  { %v766_v31 = vadd.f32 %v765_v46, %v764_v32  ;;  %v1147_v56 = vsel %vm1116_vm4, %v710_v18, %v1146_v24  ;;  %v3532_v10 = vunpack.c.l.bf16 %v3531_v13  ;;  %v3534_v27 = vunpack.c.l.bf16 %v3533_v50  ;;  %v2064_v32 = vld [vmem:[%s3333_s2 + $0x8] sm:$0xff]  }
  0x8c   :  { %v383_v40 = vrot.slane %v382_v23, 4  ;;  %v356_v62 = vadd.f32 %v355_v2, %v354_v0  ;;  %v1148_v20 = vsel %vm1118_vm5, %v738_v39, %v1147_v56  ;;  %v3536_v1 = vunpack.c.l.bf16 %v3535_v8  ;;  %v3547_v0 = vld [vmem:[#allocation35_spill] sm:$0xff] }
  0x8d   :  { %v410_v5 = vadd.f32 %v3532_v10, %v3530_v4  ;;  %v3538_v57 = vunpack.c.l.bf16 %v3537_v49  ;;  %v3540_v52 = vunpack.c.l.bf16 %v3539_v38  ;;  %v1149_v19 = vsel %vm1120_vm6, %v766_v31, %v1148_v20 }
  0x8e   :  { %v384_v12 = vadd.f32 %v383_v40, %v382_v23  ;;  %v438_v22 = vadd.f32 %v3536_v1, %v3534_v27  ;;  %v357_v51 = vrot.slane %v356_v62, 2  ;;  %v3542_v26 = vunpack.c.l.bf16 %v3541_v28  ;;  %v3551_v23 = vld [vmem:[#allocation37_spill] sm:$0xff] }
  0x8f   :  { %v466_v53 = vadd.f32 %v3540_v52, %v3538_v57  ;;  %v411_v61 = vrot.slane %v410_v5, 4  ;;  %v3544_v63 = vunpack.c.l.bf16 %v3543_v55  ;;  %v1250_v34 = vpack.c.bf16 %v1149_v19, %v1121_v11 }
  0x90   :  { %v385_v47 = vrot.slane %v384_v12, 2  ;;  %v439_v17 = vrot.slane %v438_v22, 4  ;;  %v358_v33 = vadd.f32 %v357_v51, %v356_v62  ;;  %v3546_v43 = vunpack.c.l.bf16 %v3545_v42  ;;  %v2065_v62 = vld [vmem:[%s3333_s2 + $0x10] sm:$0xff]  }
  0x91   :  { %v494_v15 = vadd.f32 %v3544_v63, %v3542_v26  ;;  %v467_v36 = vrot.slane %v466_v53, 4  ;;  %v412_v58 = vadd.f32 %v411_v61, %v410_v5  ;;  %v3548_v6 = vunpack.c.l.bf16 %v3547_v0  ;;  %1554 = vmatmul.mubr.bf16.vlgmr.msra.gmra.mrb[0].mxu0 %v1250_v34 }
  0x92   :  { %v386_v30 = vadd.f32 %v385_v47, %v384_v12  ;;  %v440_v9 = vadd.f32 %v439_v17, %v438_v22  ;;  %v3550_v16 = vunpack.c.l.bf16 %v3549_v29  ;;  %v3552_v18 = vunpack.c.l.bf16 %v3551_v23  ;;  %1992 = vmatpush3.bf16.msra.mxu0 %v2913_v44 }
  0x93   :  { %v495_v37 = vrot.slane %v494_v15, 4  ;;  %v522_v35 = vadd.f32 %v3548_v6, %v3546_v43  ;;  %v468_v14 = vadd.f32 %v467_v36, %v466_v53  ;;  %v359_v21 = vrot.slane %v358_v33, 1  ;;  %1993 = vmatprep.subr.bf16.mxu0 %v2064_v32  ;;  %v3561_v43 = vld [vmem:[#allocation38_spill] sm:$0xff]  ;;  %v3563_v6 = vld [vmem:[#allocation39_spill] sm:$0xff] }
  0x94   :  { %v550_v46 = vadd.f32 %v3552_v18, %v3550_v16  ;;  %v413_v2 = vrot.slane %v412_v58, 2  ;;  %v387_v24 = vrot.slane %v386_v30, 1  ;;  %v441_v40 = vrot.slane %v440_v9, 2 }
  0x95   :  { %v496_v39 = vadd.f32 %v495_v37, %v494_v15  ;;  %v523_v11 = vrot.slane %v522_v35, 4  ;;  %v469_v31 = vrot.slane %v468_v14, 2  ;;  %v2973_v3 = vadd.f32 %v359_v21, %v358_v33 }
  0x96   :  { %v551_v56 = vrot.slane %v550_v46, 4  ;;  %v414_v4 = vadd.f32 %v413_v2, %v412_v58  ;;  %v2975_v5 = vadd.f32 %v387_v24, %v386_v30  ;;  %v442_v20 = vadd.f32 %v441_v40, %v440_v9  ;;  %1994 = vmatpush3.bf16.msra.mxu0 %v2064_v32  ;;  %v3569_v24 = vld [vmem:[#allocation42_spill] sm:$0xff] }
  0x97   :  { %v497_v13 = vrot.slane %v496_v39, 2  ;;  %v524_v10 = vadd.f32 %v523_v11, %v522_v35  ;;  %v470_v12 = vadd.f32 %v469_v31, %v468_v14  ;;  %v3553_v1 = vunpack.c.l.bf16 %v2624_v41  ;;  %1995 = vmatprep.subr.bf16.mxu0 %v2065_v62  ;;  %v3571_v31 = vld [vmem:[#allocation43_spill] sm:$0xff] }
  0x98   :  { %v552_v50 = vadd.f32 %v551_v56, %v550_v46  ;;  %v415_v44 = vrot.slane %v414_v4, 1  ;;  %v3554_v22 = vunpack.c.l.bf16 %v2633_v25  ;;  %v443_v57 = vrot.slane %v442_v20, 1 }
  0x99   :  { %v498_v27 = vadd.f32 %v497_v13, %v496_v39  ;;  %v525_v8 = vrot.slane %v524_v10, 2  ;;  %v471_v38 = vrot.slane %v470_v12, 1  ;;  %v3555_v53 = vunpack.c.l.bf16 %v2638_v45 }
  0x9a   :  { %v578_v49 = vadd.f32 %v3554_v22, %v3553_v1  ;;  %v553_v52 = vrot.slane %v552_v50, 2  ;;  %v3556_v19 = vunpack.c.l.bf16 %v2647_v59  ;;  %v416_v61 = vadd.f32 %v415_v44, %v414_v4  ;;  %1996 = vmatpush3.bf16.msra.mxu0 %v2065_v62 }
  0x9b   :  { %v499_v28 = vrot.slane %v498_v27, 1  ;;  %v526_v26 = vadd.f32 %v525_v8, %v524_v10  ;;  %v444_v63 = vadd.f32 %v443_v57, %v442_v20  ;;  %v472_v15 = vadd.f32 %v471_v38, %v470_v12  ;;  %v3573_v20 = vld [vmem:[#allocation44_spill] sm:$0xff] }
  0x9c   :  { %v606_v51 = vadd.f32 %v3556_v19, %v3555_v53  ;;  %v579_v55 = vrot.slane %v578_v49, 4  ;;  %v554_v41 = vadd.f32 %v553_v52, %v552_v50  ;;  %v3557_v36 = vunpack.c.l.bf16 %v2652_v7  ;;  %v3565_v7 = vld [vmem:[#allocation40_spill] sm:$0xff]  ;;  %v3575_v50 = vld [vmem:[#allocation45_spill] sm:$0xff] }
  0x9d   :  { %v500_v25 = vadd.f32 %v499_v28, %v498_v27  ;;  %v527_v47 = vrot.slane %v526_v26, 1  ;;  %v3558_v32 = vunpack.c.l.bf16 %v2661_v60  ;;  %v3559_v58 = vunpack.c.l.bf16 %v2666_v48  ;;  %v3567_v60 = vld [vmem:[#allocation41_spill] sm:$0xff] }
  0x9e   :  { %v607_v34 = vrot.slane %v606_v51, 4  ;;  %v580_v17 = vadd.f32 %v579_v55, %v578_v49  ;;  %v555_v59 = vrot.slane %v554_v41, 1  ;;  %v3560_v37 = vunpack.c.l.bf16 %v2675_v54 }
  0x9f   :  { %v634_v45 = vadd.f32 %v3558_v32, %v3557_v36  ;;  %v3562_v0 = vunpack.c.l.bf16 %v3561_v43  ;;  %v3564_v35 = vunpack.c.l.bf16 %v3563_v6  ;;  %v528_v9 = vadd.f32 %v527_v47, %v526_v26 }
  0xa0   :  { %v608_v33 = vadd.f32 %v607_v34, %v606_v51  ;;  %v662_v42 = vadd.f32 %v3560_v37, %v3559_v58  ;;  %v581_v14 = vrot.slane %v580_v17, 2  ;;  %v3566_v16 = vunpack.c.l.bf16 %v3565_v7 }
  0xa1   :  { %v690_v30 = vadd.f32 %v3564_v35, %v3562_v0  ;;  %v635_v29 = vrot.slane %v634_v45, 4  ;;  %v3568_v23 = vunpack.c.l.bf16 %v3567_v60  ;;  %v556_v46 = vadd.f32 %v555_v59, %v554_v41  ;;  %v3017_v35 = vld [vmem:[%s3332_s0 + $0x200] sm:$0xff] }
  0xa2   :  { %v609_v21 = vrot.slane %v608_v33, 2  ;;  %v663_v2 = vrot.slane %v662_v42, 4  ;;  %v582_v39 = vadd.f32 %v581_v14, %v580_v17  ;;  %v3570_v40 = vunpack.c.l.bf16 %v3569_v24  ;;  %v3030_v60 = vld [vmem:[%s3332_s0 + $0x220] sm:$0xff]  ;;  %v3060_v24 = vld [vmem:[%s3332_s0 + $0x270] sm:$0xff] }
  0xa3   :  { %v718_v18 = vadd.f32 %v3568_v23, %v3566_v16  ;;  %v691_v48 = vrot.slane %v690_v30, 4  ;;  %v636_v54 = vadd.f32 %v635_v29, %v634_v45  ;;  %v3572_v56 = vunpack.c.l.bf16 %v3571_v31  ;;  %v3070_v31 = vld [vmem:[%s3332_s0 + $0x290] sm:$0xff] }
  0xa4   :  { %v610_v4 = vadd.f32 %v609_v21, %v608_v33  ;;  %v664_v13 = vadd.f32 %v663_v2, %v662_v42  ;;  %v3574_v12 = vunpack.c.l.bf16 %v3573_v20  ;;  %v3576_v44 = vunpack.c.l.bf16 %v3575_v50  ;;  %v3047_v2 = vld [vmem:[%s3332_s0 + $0x250] sm:$0xff] }
  0xa5   :  { %v719_v11 = vrot.slane %v718_v18, 4  ;;  %v746_v62 = vadd.f32 %v3572_v56, %v3570_v40  ;;  %v692_v10 = vadd.f32 %v691_v48, %v690_v30  ;;  %v583_v8 = vrot.slane %v582_v39, 1  ;;  %v3052_v48 = vld [vmem:[%s3332_s0 + $0x260] sm:$0xff] }
  0xa6   :  { %v774_v27 = vadd.f32 %v3576_v44, %v3574_v12  ;;  %v637_v1 = vrot.slane %v636_v54, 2  ;;  %v611_v57 = vrot.slane %v610_v4, 1  ;;  %v665_v38 = vrot.slane %v664_v13, 2  ;;  %v3065_v40 = vld [vmem:[%s3332_s0 + $0x280] sm:$0xff]  ;;  %v3095_v44 = vld [vmem:[%s3332_s0 + $0x2d0] sm:$0xff] }
  0xa7   :  { %v720_v22 = vadd.f32 %v719_v11, %v718_v18  ;;  %v747_v49 = vrot.slane %v746_v62, 4  ;;  %v693_v52 = vrot.slane %v692_v10, 2  ;;  %v584_v19 = vadd.f32 %v583_v8, %v582_v39  ;;  %v3105_v8 = vld [vmem:[%s3332_s0 + $0x2f0] sm:$0xff] }
  0xa8   :  { %v775_v53 = vrot.slane %v774_v27, 4  ;;  %v638_v51 = vadd.f32 %v637_v1, %v636_v54  ;;  %v612_v55 = vadd.f32 %v611_v57, %v610_v4  ;;  %v666_v41 = vadd.f32 %v665_v38, %v664_v13  ;;  %v3077_v4 = vld [vmem:[%s3332_s0 + $0x2a0] sm:$0xff]  ;;  %v3082_v13 = vld [vmem:[%s3332_s0 + $0x2b0] sm:$0xff] }
  0xa9   :  { %v721_v28 = vrot.slane %v720_v22, 2  ;;  %v748_v26 = vadd.f32 %v747_v49, %v746_v62  ;;  %v694_v34 = vadd.f32 %v693_v52, %v692_v10  ;;  %v1129_v45 = vsel %vm1108_vm0, %v2975_v5, %v2973_v3  ;;  %v3023_v5 = vld [vmem:[%s3332_s0 + $0x210] sm:$0xff]  ;;  %v3087_v10 = vld [vmem:[%s3332_s0 + $0x2c0] sm:$0xff] }
  0xaa   :  { %v776_v47 = vadd.f32 %v775_v53, %v774_v27  ;;  %v639_v17 = vrot.slane %v638_v51, 1  ;;  %v667_v59 = vrot.slane %v666_v41, 1  ;;  %v1130_v37 = vsel %vm1110_vm1, %v416_v61, %v1129_v45  ;;  %v3100_v27 = vld [vmem:[%s3332_s0 + $0x2e0] sm:$0xff] }
  0xab   :  { %v722_v36 = vadd.f32 %v721_v28, %v720_v22  ;;  %v749_v32 = vrot.slane %v748_v26, 2  ;;  %v695_v33 = vrot.slane %v694_v34, 1  ;;  %v1131_v6 = vsel %vm1112_vm2, %v444_v63, %v1130_v37 }
  0xac   :  { %v777_v58 = vrot.slane %v776_v47, 2  ;;  %v640_v42 = vadd.f32 %v639_v17, %v638_v51  ;;  %v668_v30 = vadd.f32 %v667_v59, %v666_v41  ;;  %v1132_v3 = vsel %vm1114_vm3, %v472_v15, %v1131_v6  ;;  %v3035_v15 = vld [vmem:[%s3332_s0 + $0x230] sm:$0xff] }
  0xad   :  { %v723_v43 = vrot.slane %v722_v36, 1  ;;  %v750_v0 = vadd.f32 %v749_v32, %v748_v26  ;;  %v696_v14 = vadd.f32 %v695_v33, %v694_v34  ;;  %v1133_v16 = vsel %vm1116_vm4, %v500_v25, %v1132_v3  ;;  %v3042_v25 = vld [vmem:[%s3332_s0 + $0x240] sm:$0xff] }
  0xae   :  { %v778_v29 = vadd.f32 %v777_v58, %v776_v47  ;;  %v1157_v63 = vsel %vm1108_vm0, %v612_v55, %v584_v19  ;;  %v1134_v18 = vsel %vm1118_vm5, %v528_v9, %v1133_v16  ;;  %v277_v39 = vunpack.c.h.bf16 %v3017_v35 }
  0xaf   :  { %v724_v61 = vadd.f32 %v723_v43, %v722_v36  ;;  %v751_v7 = vrot.slane %v750_v0, 1  ;;  %v1158_v21 = vsel %vm1110_vm1, %v640_v42, %v1157_v63  ;;  %v1135_v54 = vsel %vm1120_vm6, %v556_v46, %v1134_v18 }
  0xb0   :  { %v779_v23 = vrot.slane %v778_v29, 1  ;;  %v1159_v11 = vsel %vm1112_vm2, %v668_v30, %v1158_v21  ;;  %v281_v56 = vunpack.c.h.bf16 %v3023_v5  ;;  %v285_v20 = vunpack.c.h.bf16 %v3030_v60 }
  0xb1   :  { %v752_v9 = vadd.f32 %v751_v7, %v750_v0  ;;  %v1160_v62 = vsel %vm1114_vm3, %v696_v14, %v1159_v11  ;;  %v289_v12 = vunpack.c.h.bf16 %v3035_v15  ;;  %v293_v1 = vunpack.c.h.bf16 %v3042_v25 }
  0xb2   :  { %v780_v46 = vadd.f32 %v779_v23, %v778_v29  ;;  %v1161_v50 = vsel %vm1116_vm4, %v724_v61, %v1160_v62  ;;  %v297_v22 = vunpack.c.h.bf16 %v3047_v2  ;;  %v301_v49 = vunpack.c.h.bf16 %v3052_v48 }
  0xb3   :  { %v1162_v57 = vsel %vm1118_vm5, %v752_v9, %v1161_v50  ;;  %v305_v38 = vunpack.c.h.bf16 %v3060_v24  ;;  %v309_v52 = vunpack.c.h.bf16 %v3065_v40  ;;  %v313_v53 = vunpack.c.h.bf16 %v3070_v31 }
  0xb4   :  { %v1163_v19 = vsel %vm1120_vm6, %v780_v46, %v1162_v57  ;;  %v317_v51 = vunpack.c.h.bf16 %v3077_v4  ;;  %v321_v28 = vunpack.c.h.bf16 %v3082_v13  ;;  %v325_v26 = vunpack.c.h.bf16 %v3087_v10 }
  0xb5   :  { %v1252_v55 = vpack.c.bf16 %v1163_v19, %v1135_v54  ;;  %v329_v41 = vunpack.c.h.bf16 %v3095_v44  ;;  %v333_v34 = vunpack.c.h.bf16 %v3100_v27  ;;  %v337_v47 = vunpack.c.h.bf16 %v3105_v8 }
  0xb6   :  { %v795_v17 = vadd.f32 %v281_v56, %v277_v39  ;;  %v823_v36 = vadd.f32 %v289_v12, %v285_v20  ;;  %v851_v32 = vadd.f32 %v297_v22, %v293_v1  ;;  %v879_v45 = vadd.f32 %v305_v38, %v301_v49 }
  0xb7   :  { %1602 = vmatmul.mubr.bf16.vlgmr.msra.gmra.mrb[0].mxu1 %v1252_v55  ;;  %v907_v59 = vadd.f32 %v313_v53, %v309_v52  ;;  %v935_v33 = vadd.f32 %v321_v28, %v317_v51  ;;  %v963_v58 = vadd.f32 %v329_v41, %v325_v26  ;;  %v991_v37 = vadd.f32 %v337_v47, %v333_v34  ;;  %v3124_v55 = vld [vmem:[%s3332_s0 + $0x208] sm:$0xff] }
  0xb8   :  { %v796_v42 = vrot.slane %v795_v17, 4  ;;  %v824_v43 = vrot.slane %v823_v36, 4  ;;  %v852_v0 = vrot.slane %v851_v32, 4  ;;  %v880_v6 = vrot.slane %v879_v45, 4 }
  0xb9   :  { %v908_v30 = vrot.slane %v907_v59, 4  ;;  %v936_v14 = vrot.slane %v935_v33, 4  ;;  %v964_v29 = vrot.slane %v963_v58, 4  ;;  %v992_v3 = vrot.slane %v991_v37, 4 }
  0xba   :  { %v797_v61 = vadd.f32 %v796_v42, %v795_v17  ;;  %v825_v7 = vadd.f32 %v824_v43, %v823_v36  ;;  %v853_v16 = vadd.f32 %v852_v0, %v851_v32  ;;  %v881_v63 = vadd.f32 %v880_v6, %v879_v45  ;;  %v3129_v36 = vld [vmem:[%s3332_s0 + $0x218] sm:$0xff]  ;;  %v3134_v32 = vld [vmem:[%s3332_s0 + $0x228] sm:$0xff] }
  0xbb   :  { %v909_v23 = vadd.f32 %v908_v30, %v907_v59  ;;  %v937_v18 = vadd.f32 %v936_v14, %v935_v33  ;;  %v965_v21 = vadd.f32 %v964_v29, %v963_v58  ;;  %v993_v39 = vadd.f32 %v992_v3, %v991_v37  ;;  %v3139_v37 = vld [vmem:[%s3332_s0 + $0x238] sm:$0xff]  ;;  %v3144_v42 = vld [vmem:[%s3332_s0 + $0x248] sm:$0xff] }
  0xbc   :  { %v798_v9 = vrot.slane %v797_v61, 2  ;;  %v826_v54 = vrot.slane %v825_v7, 2  ;;  %v854_v11 = vrot.slane %v853_v16, 2  ;;  %v882_v56 = vrot.slane %v881_v63, 2  ;;  %v3149_v43 = vld [vmem:[%s3332_s0 + $0x258] sm:$0xff]  ;;  %v3154_v29 = vld [vmem:[%s3332_s0 + $0x268] sm:$0xff] }
  0xbd   :  { %v910_v46 = vrot.slane %v909_v23, 2  ;;  %v938_v62 = vrot.slane %v937_v18, 2  ;;  %v966_v20 = vrot.slane %v965_v21, 2  ;;  %v994_v12 = vrot.slane %v993_v39, 2  ;;  %v3159_v3 = vld [vmem:[%s3332_s0 + $0x278] sm:$0xff] }
  0xbe   :  { %v799_v50 = vadd.f32 %v798_v9, %v797_v61  ;;  %v827_v1 = vadd.f32 %v826_v54, %v825_v7  ;;  %v855_v22 = vadd.f32 %v854_v11, %v853_v16  ;;  %v883_v49 = vadd.f32 %v882_v56, %v881_v63  ;;  %v3164_v61 = vld [vmem:[%s3332_s0 + $0x288] sm:$0xff]  ;;  %v3170_v16 = vld [vmem:[%s3332_s0 + $0x298] sm:$0xff] }
  0xbf   :  { %v911_v57 = vadd.f32 %v910_v46, %v909_v23  ;;  %v939_v38 = vadd.f32 %v938_v62, %v937_v18  ;;  %v967_v52 = vadd.f32 %v966_v20, %v965_v21  ;;  %v995_v53 = vadd.f32 %v994_v12, %v993_v39  ;;  %v3175_v63 = vld [vmem:[%s3332_s0 + $0x2a8] sm:$0xff]  ;;  %v3180_v23 = vld [vmem:[%s3332_s0 + $0x2b8] sm:$0xff] }
  0xc0   :  { %v800_v19 = vrot.slane %v799_v50, 1  ;;  %v828_v51 = vrot.slane %v827_v1, 1  ;;  %v856_v28 = vrot.slane %v855_v22, 1  ;;  %v884_v26 = vrot.slane %v883_v49, 1  ;;  %v3189_v54 = vld [vmem:[%s3332_s0 + $0x2c8] sm:$0xff]  ;;  %v3194_v11 = vld [vmem:[%s3332_s0 + $0x2d8] sm:$0xff] }
  0xc1   :  { %v912_v41 = vrot.slane %v911_v57, 1  ;;  %v940_v34 = vrot.slane %v939_v38, 1  ;;  %v968_v47 = vrot.slane %v967_v52, 1  ;;  %v996_v17 = vrot.slane %v995_v53, 1  ;;  %3577 = vst [vmem:[#allocation3_spill] sm:$0xff] %v3189_v54  ;;  %3578 = vst [vmem:[#allocation4_spill] sm:$0xff] %v3194_v11 }
  0xc2   :  { %v801_v45 = vadd.f32 %v800_v19, %v799_v50  ;;  %v829_v59 = vadd.f32 %v828_v51, %v827_v1  ;;  %v857_v33 = vadd.f32 %v856_v28, %v855_v22  ;;  %v885_v58 = vadd.f32 %v884_v26, %v883_v49  ;;  %v3199_v56 = vld [vmem:[%s3332_s0 + $0x2e8] sm:$0xff]  ;;  %v3208_v50 = vld [vmem:[%s3332_s0 + $0x2f8] sm:$0xff] }
  0xc3   :  { %v913_v0 = vadd.f32 %v912_v41, %v911_v57  ;;  %v941_v6 = vadd.f32 %v940_v34, %v939_v38  ;;  %v969_v30 = vadd.f32 %v968_v47, %v967_v52  ;;  %v997_v14 = vadd.f32 %v996_v17, %v995_v53  ;;  %3579 = vst [vmem:[#allocation5_spill] sm:$0xff] %v3199_v56 }
  0xc4   :  { %v1178_v7 = vsel %vm1108_vm0, %v829_v59, %v801_v45  ;;  %v279_v18 = vunpack.c.h.bf16 %v3124_v55  ;;  %v283_v21 = vunpack.c.h.bf16 %v3129_v36  ;;  %v287_v39 = vunpack.c.h.bf16 %v3134_v32  ;;  %3580 = vst [vmem:[#allocation6_spill] sm:$0xff] %v3208_v50 }
  0xc5   :  { %v1179_v9 = vsel %vm1110_vm1, %v857_v33, %v1178_v7  ;;  %v291_v46 = vunpack.c.h.bf16 %v3139_v37  ;;  %v295_v62 = vunpack.c.h.bf16 %v3144_v42  ;;  %v299_v20 = vunpack.c.h.bf16 %v3149_v43 }
  0xc6   :  { %v1180_v12 = vsel %vm1112_vm2, %v885_v58, %v1179_v9  ;;  %v303_v1 = vunpack.c.h.bf16 %v3154_v29  ;;  %v307_v22 = vunpack.c.h.bf16 %v3159_v3  ;;  %v311_v49 = vunpack.c.h.bf16 %v3164_v61 }
  0xc7   :  { %v1181_v57 = vsel %vm1114_vm3, %v913_v0, %v1180_v12  ;;  %v315_v38 = vunpack.c.h.bf16 %v3170_v16  ;;  %v319_v52 = vunpack.c.h.bf16 %v3175_v63  ;;  %v323_v53 = vunpack.c.h.bf16 %v3180_v23 }
  0xc8   :  { %v1182_v19 = vsel %vm1116_vm4, %v941_v6, %v1181_v57  ;;  %v327_v51 = vunpack.c.h.bf16 %v3189_v54  ;;  %v331_v28 = vunpack.c.h.bf16 %v3194_v11  ;;  %v335_v26 = vunpack.c.h.bf16 %v3199_v56 }
  0xc9   :  { %v1183_v41 = vsel %vm1118_vm5, %v969_v30, %v1182_v19  ;;  %v339_v34 = vunpack.c.h.bf16 %v3208_v50  ;;  %v809_v47 = vadd.f32 %v283_v21, %v279_v18  ;;  %v837_v17 = vadd.f32 %v291_v46, %v287_v39 }
  0xca   :  { %v1184_v45 = vsel %vm1120_vm6, %v997_v14, %v1183_v41  ;;  %v865_v59 = vadd.f32 %v299_v20, %v295_v62  ;;  %v893_v33 = vadd.f32 %v307_v22, %v303_v1  ;;  %v921_v58 = vadd.f32 %v315_v38, %v311_v49 }
  0xcb   :  { %v1255_v0 = vpack.c.bf16 %v1184_v45, %v1184_v45  ;;  %v810_v7 = vrot.slane %v809_v47, 4  ;;  %v838_v6 = vrot.slane %v837_v17, 4  ;;  %v949_v9 = vadd.f32 %v323_v53, %v319_v52 }
  0xcc   :  { %v866_v12 = vrot.slane %v865_v59, 4  ;;  %v894_v57 = vrot.slane %v893_v33, 4  ;;  %v922_v11 = vrot.slane %v921_v58, 4  ;;  %v977_v54 = vadd.f32 %v331_v28, %v327_v51 }
  0xcd   :  { %1561 = vmatprep.mubr.bf16.mxu0 %v1255_v0  ;;  %v811_v56 = vadd.f32 %v810_v7, %v809_v47  ;;  %v839_v30 = vadd.f32 %v838_v6, %v837_v17  ;;  %v950_v19 = vrot.slane %v949_v9, 4  ;;  %v1005_v50 = vadd.f32 %v339_v34, %v335_v26 }
  0xce   :  { %v867_v18 = vadd.f32 %v866_v12, %v865_v59  ;;  %v895_v21 = vadd.f32 %v894_v57, %v893_v33  ;;  %v923_v39 = vadd.f32 %v922_v11, %v921_v58  ;;  %v978_v14 = vrot.slane %v977_v54, 4 }
  0xcf   :  { %v812_v46 = vrot.slane %v811_v56, 2  ;;  %v840_v62 = vrot.slane %v839_v30, 2  ;;  %v951_v20 = vadd.f32 %v950_v19, %v949_v9  ;;  %v1006_v1 = vrot.slane %v1005_v50, 4 }
  0xd0   :  { %v868_v22 = vrot.slane %v867_v18, 2  ;;  %v896_v49 = vrot.slane %v895_v21, 2  ;;  %v924_v38 = vrot.slane %v923_v39, 2  ;;  %v979_v52 = vadd.f32 %v978_v14, %v977_v54 }
  0xd1   :  { %v813_v53 = vadd.f32 %v812_v46, %v811_v56  ;;  %v841_v41 = vadd.f32 %v840_v62, %v839_v30  ;;  %v952_v51 = vrot.slane %v951_v20, 2  ;;  %v1007_v28 = vadd.f32 %v1006_v1, %v1005_v50 }
  0xd2   :  { %v869_v47 = vadd.f32 %v868_v22, %v867_v18  ;;  %v897_v17 = vadd.f32 %v896_v49, %v895_v21  ;;  %v925_v45 = vadd.f32 %v924_v38, %v923_v39  ;;  %v980_v26 = vrot.slane %v979_v52, 2 }
  0xd3   :  { %v814_v34 = vrot.slane %v813_v53, 1  ;;  %v842_v59 = vrot.slane %v841_v41, 1  ;;  %v953_v11 = vadd.f32 %v952_v51, %v951_v20  ;;  %v1008_v33 = vrot.slane %v1007_v28, 2 }
  0xd4   :  { %v870_v58 = vrot.slane %v869_v47, 1  ;;  %v898_v0 = vrot.slane %v897_v17, 1  ;;  %v926_v7 = vrot.slane %v925_v45, 1  ;;  %v981_v6 = vadd.f32 %v980_v26, %v979_v52 }
  0xd5   :  { %v815_v9 = vadd.f32 %v814_v34, %v813_v53  ;;  %v843_v12 = vadd.f32 %v842_v59, %v841_v41  ;;  %v954_v57 = vrot.slane %v953_v11, 1  ;;  %v1009_v54 = vadd.f32 %v1008_v33, %v1007_v28 }
  0xd6   :  { %v871_v56 = vadd.f32 %v870_v58, %v869_v47  ;;  %v899_v30 = vadd.f32 %v898_v0, %v897_v17  ;;  %v927_v19 = vadd.f32 %v926_v7, %v925_v45  ;;  %v982_v50 = vrot.slane %v981_v6, 1 }
  0xd7   :  { %v955_v18 = vadd.f32 %v954_v57, %v953_v11  ;;  %v1010_v21 = vrot.slane %v1009_v54, 1  ;;  %v1192_v39 = vsel %vm1108_vm0, %v843_v12, %v815_v9  ;;  %v276_v14 = vunpack.c.l.bf16 %v3017_v35 }
  0xd8   :  { %v983_v46 = vadd.f32 %v982_v50, %v981_v6  ;;  %v1193_v62 = vsel %vm1110_vm1, %v871_v56, %v1192_v39  ;;  %v280_v20 = vunpack.c.l.bf16 %v3023_v5  ;;  %v284_v1 = vunpack.c.l.bf16 %v3030_v60 }
  0xd9   :  { %v1011_v22 = vadd.f32 %v1010_v21, %v1009_v54  ;;  %v1194_v49 = vsel %vm1112_vm2, %v899_v30, %v1193_v62  ;;  %v288_v38 = vunpack.c.l.bf16 %v3035_v15  ;;  %v292_v52 = vunpack.c.l.bf16 %v3042_v25 }
  0xda   :  { %v1195_v53 = vsel %vm1114_vm3, %v927_v19, %v1194_v49  ;;  %v296_v41 = vunpack.c.l.bf16 %v3047_v2  ;;  %v300_v35 = vunpack.c.l.bf16 %v3052_v48  ;;  %v304_v51 = vunpack.c.l.bf16 %v3060_v24 }
  0xdb   :  { %v1196_v28 = vsel %vm1116_vm4, %v955_v18, %v1195_v53  ;;  %v308_v5 = vunpack.c.l.bf16 %v3065_v40  ;;  %v312_v60 = vunpack.c.l.bf16 %v3070_v31  ;;  %v316_v47 = vunpack.c.l.bf16 %v3077_v4 }
  0xdc   :  { %v1197_v15 = vsel %vm1118_vm5, %v983_v46, %v1196_v28  ;;  %v320_v25 = vunpack.c.l.bf16 %v3082_v13  ;;  %v324_v17 = vunpack.c.l.bf16 %v3087_v10  ;;  %v328_v2 = vunpack.c.l.bf16 %v3095_v44 }
  0xdd   :  { %v1198_v48 = vsel %vm1120_vm6, %v1011_v22, %v1197_v15  ;;  %v332_v24 = vunpack.c.l.bf16 %v3100_v27  ;;  %v336_v45 = vunpack.c.l.bf16 %v3105_v8  ;;  %v788_v26 = vadd.f32 %v280_v20, %v276_v14 }
  0xde   :  { %v1257_v40 = vpack.c.bf16 %v1198_v48, %v1198_v48  ;;  %v816_v34 = vadd.f32 %v288_v38, %v284_v1  ;;  %v844_v31 = vadd.f32 %v296_v41, %v292_v52  ;;  %v872_v59 = vadd.f32 %v304_v51, %v300_v35 }
  0xdf   :  { %v789_v4 = vrot.slane %v788_v26, 4  ;;  %v900_v11 = vadd.f32 %v312_v60, %v308_v5  ;;  %v928_v33 = vadd.f32 %v320_v25, %v316_v47  ;;  %v956_v58 = vadd.f32 %v328_v2, %v324_v17 }
  0xe0   :  { %1609 = vmatprep.mubr.bf16.mxu1 %v1257_v40  ;;  %v817_v13 = vrot.slane %v816_v34, 4  ;;  %v845_v10 = vrot.slane %v844_v31, 4  ;;  %v873_v0 = vrot.slane %v872_v59, 4  ;;  %v984_v44 = vadd.f32 %v336_v45, %v332_v24 }
  0xe1   :  { %v790_v7 = vadd.f32 %v789_v4, %v788_v26  ;;  %v901_v6 = vrot.slane %v900_v11, 4  ;;  %v929_v9 = vrot.slane %v928_v33, 4  ;;  %v957_v27 = vrot.slane %v956_v58, 4 }
  0xe2   :  { %v818_v12 = vadd.f32 %v817_v13, %v816_v34  ;;  %v846_v8 = vadd.f32 %v845_v10, %v844_v31  ;;  %v874_v57 = vadd.f32 %v873_v0, %v872_v59  ;;  %v985_v54 = vrot.slane %v984_v44, 4 }
  0xe3   :  { %v791_v56 = vrot.slane %v790_v7, 2  ;;  %v902_v30 = vadd.f32 %v901_v6, %v900_v11  ;;  %v930_v19 = vadd.f32 %v929_v9, %v928_v33  ;;  %v958_v50 = vadd.f32 %v957_v27, %v956_v58 }
  0xe4   :  { %v819_v18 = vrot.slane %v818_v12, 2  ;;  %v847_v21 = vrot.slane %v846_v8, 2  ;;  %v875_v39 = vrot.slane %v874_v57, 2  ;;  %v986_v14 = vadd.f32 %v985_v54, %v984_v44  ;;  %v3583_v54 = vld [vmem:[#allocation5_spill] sm:$0xff] }
  0xe5   :  { %v792_v46 = vadd.f32 %v791_v56, %v790_v7  ;;  %v903_v62 = vrot.slane %v902_v30, 2  ;;  %v931_v20 = vrot.slane %v930_v19, 2  ;;  %v959_v1 = vrot.slane %v958_v50, 2  ;;  %v3584_v56 = vld [vmem:[#allocation6_spill] sm:$0xff] }
  0xe6   :  { %v820_v22 = vadd.f32 %v819_v18, %v818_v12  ;;  %v848_v49 = vadd.f32 %v847_v21, %v846_v8  ;;  %v876_v38 = vadd.f32 %v875_v39, %v874_v57  ;;  %v987_v52 = vrot.slane %v986_v14, 2  ;;  %v3581_v12 = vld [vmem:[#allocation3_spill] sm:$0xff]  ;;  %v3582_v8 = vld [vmem:[#allocation4_spill] sm:$0xff] }
  0xe7   :  { %v793_v53 = vrot.slane %v792_v46, 1  ;;  %v904_v41 = vadd.f32 %v903_v62, %v902_v30  ;;  %v932_v35 = vadd.f32 %v931_v20, %v930_v19  ;;  %v960_v51 = vadd.f32 %v959_v1, %v958_v50 }
  0xe8   :  { %v821_v28 = vrot.slane %v820_v22, 1  ;;  %v849_v5 = vrot.slane %v848_v49, 1  ;;  %v877_v60 = vrot.slane %v876_v38, 1  ;;  %v988_v47 = vadd.f32 %v987_v52, %v986_v14 }
  0xe9   :  { %v794_v15 = vadd.f32 %v793_v53, %v792_v46  ;;  %v905_v25 = vrot.slane %v904_v41, 1  ;;  %v933_v17 = vrot.slane %v932_v35, 1  ;;  %v961_v2 = vrot.slane %v960_v51, 1 }
  0xea   :  { %v822_v48 = vadd.f32 %v821_v28, %v820_v22  ;;  %v850_v24 = vadd.f32 %v849_v5, %v848_v49  ;;  %v878_v45 = vadd.f32 %v877_v60, %v876_v38  ;;  %v989_v26 = vrot.slane %v988_v47, 1 }
  0xeb   :  { %v906_v40 = vadd.f32 %v905_v25, %v904_v41  ;;  %v934_v34 = vadd.f32 %v933_v17, %v932_v35  ;;  %v962_v31 = vadd.f32 %v961_v2, %v960_v51  ;;  %v278_v59 = vunpack.c.l.bf16 %v3124_v55 }
  0xec   :  { %v990_v4 = vadd.f32 %v989_v26, %v988_v47  ;;  %v1171_v11 = vsel %vm1108_vm0, %v822_v48, %v794_v15  ;;  %v282_v33 = vunpack.c.l.bf16 %v3129_v36  ;;  %v286_v58 = vunpack.c.l.bf16 %v3134_v32 }
  0xed   :  { %v1172_v13 = vsel %vm1110_vm1, %v850_v24, %v1171_v11  ;;  %v290_v10 = vunpack.c.l.bf16 %v3139_v37  ;;  %v294_v0 = vunpack.c.l.bf16 %v3144_v42  ;;  %v298_v44 = vunpack.c.l.bf16 %v3149_v43 }
  0xee   :  { %v1173_v7 = vsel %vm1112_vm2, %v878_v45, %v1172_v13  ;;  %v302_v6 = vunpack.c.l.bf16 %v3154_v29  ;;  %v306_v55 = vunpack.c.l.bf16 %v3159_v3  ;;  %v310_v9 = vunpack.c.l.bf16 %v3164_v61 }
  0xef   :  { %v1174_v36 = vsel %vm1114_vm3, %v906_v40, %v1173_v7  ;;  %v314_v32 = vunpack.c.l.bf16 %v3170_v16  ;;  %v318_v27 = vunpack.c.l.bf16 %v3175_v63  ;;  %v322_v37 = vunpack.c.l.bf16 %v3180_v23 }
  0xf0   :  { %v1175_v42 = vsel %vm1116_vm4, %v934_v34, %v1174_v36  ;;  %v326_v43 = vunpack.c.l.bf16 %v3581_v12  ;;  %v330_v57 = vunpack.c.l.bf16 %v3582_v8  ;;  %v334_v29 = vunpack.c.l.bf16 %v3583_v54 }
  0xf1   :  { %v1176_v3 = vsel %vm1118_vm5, %v962_v31, %v1175_v42  ;;  %v338_v61 = vunpack.c.l.bf16 %v3584_v56  ;;  %v802_v30 = vadd.f32 %v282_v33, %v278_v59  ;;  %v830_v19 = vadd.f32 %v290_v10, %v286_v58 }
  0xf2   :  { %v1177_v16 = vsel %vm1120_vm6, %v990_v4, %v1176_v3  ;;  %v858_v50 = vadd.f32 %v298_v44, %v294_v0  ;;  %v886_v63 = vadd.f32 %v306_v55, %v302_v6  ;;  %v914_v18 = vadd.f32 %v314_v32, %v310_v9 }
  0xf3   :  { %v1254_v23 = vpack.c.bf16 %v1177_v16, %v1177_v16  ;;  %v803_v21 = vrot.slane %v802_v30, 4  ;;  %v831_v39 = vrot.slane %v830_v19, 4  ;;  %v942_v14 = vadd.f32 %v322_v37, %v318_v27  ;;  %v2066_v16 = vld [vmem:[%s3333_s2 + $0x18] sm:$0xff]  }
  0xf4   :  { %v859_v46 = vrot.slane %v858_v50, 4  ;;  %v887_v62 = vrot.slane %v886_v63, 4  ;;  %v915_v20 = vrot.slane %v914_v18, 4  ;;  %v970_v1 = vadd.f32 %v330_v57, %v326_v43  ;;  %1997 = vmatprep.subr.bf16.mxu0 %v2066_v16 }
  0xf5   :  { %1562 = vmatmul.mubr.bf16.gmra.mrb[4].mxu0 %v1254_v23  ;;  %v804_v22 = vadd.f32 %v803_v21, %v802_v30  ;;  %v832_v49 = vadd.f32 %v831_v39, %v830_v19  ;;  %v943_v38 = vrot.slane %v942_v14, 4  ;;  %v998_v52 = vadd.f32 %v338_v61, %v334_v29  ;;  %v2070_v23 = vld [vmem:[%s3333_s2 + $0x38] sm:$0xff]   ;;  %v2071_v21 = vld [vmem:[%s3334_s3] sm:$0xff]   ;;  %v2072_v39 = vld [vmem:[%s3334_s3 + $0x8] sm:$0xff]  }
  0xf6   :  { %v860_v53 = vadd.f32 %v859_v46, %v858_v50  ;;  %v888_v41 = vadd.f32 %v887_v62, %v886_v63  ;;  %v916_v35 = vadd.f32 %v915_v20, %v914_v18  ;;  %v971_v51 = vrot.slane %v970_v1, 4  ;;  %1998 = vmatpush3.bf16.msra.mxu0 %v2066_v16  ;;  %v2067_v50 = vld [vmem:[%s3333_s2 + $0x20] sm:$0xff]   ;;  %v2068_v63 = vld [vmem:[%s3333_s2 + $0x28] sm:$0xff]   ;;  %v2069_v18 = vld [vmem:[%s3333_s2 + $0x30] sm:$0xff]   ;;  %2011 = vmatprep.subr.bf16.mxu1 %v2071_v21 }
  0xf7   :  { %v805_v28 = vrot.slane %v804_v22, 2  ;;  %v833_v5 = vrot.slane %v832_v49, 2  ;;  %v944_v60 = vadd.f32 %v943_v38, %v942_v14  ;;  %v999_v47 = vrot.slane %v998_v52, 4  ;;  %1999 = vmatprep.subr.bf16.mxu0 %v2067_v50  ;;  %2012 = vmatpush3.bf16.msra.mxu1 %v2071_v21  ;;  %v2073_v46 = vld [vmem:[%s3334_s3 + $0x10] sm:$0xff]   ;;  %v2074_v38 = vld [vmem:[%s3334_s3 + $0x18] sm:$0xff]  }
  0xf8   :  { %v861_v15 = vrot.slane %v860_v53, 2  ;;  %v889_v25 = vrot.slane %v888_v41, 2  ;;  %v917_v17 = vrot.slane %v916_v35, 2  ;;  %v972_v2 = vadd.f32 %v971_v51, %v970_v1  ;;  %2013 = vmatprep.subr.bf16.mxu1 %v2072_v39 }
  0xf9   :  { %v806_v48 = vadd.f32 %v805_v28, %v804_v22  ;;  %v834_v24 = vadd.f32 %v833_v5, %v832_v49  ;;  %v945_v45 = vrot.slane %v944_v60, 2  ;;  %v1000_v26 = vadd.f32 %v999_v47, %v998_v52  ;;  %v2075_v52 = vld [vmem:[%s3334_s3 + $0x20] sm:$0xff]  }
  0xfa   :  { %v862_v40 = vadd.f32 %v861_v15, %v860_v53  ;;  %v890_v34 = vadd.f32 %v889_v25, %v888_v41  ;;  %v918_v31 = vadd.f32 %v917_v17, %v916_v35  ;;  %v973_v59 = vrot.slane %v972_v2, 2  ;;  %2000 = vmatpush3.bf16.msra.mxu0 %v2067_v50  ;;  %v2076_v53 = vld [vmem:[%s3334_s3 + $0x28] sm:$0xff]   ;;  %v1865_v41 = vld [vmem:[%s3335_s4] ss:$0 sm:$0xff] }
  0xfb   :  { %v807_v4 = vrot.slane %v806_v48, 1  ;;  %v835_v11 = vrot.slane %v834_v24, 1  ;;  %v946_v33 = vadd.f32 %v945_v45, %v944_v60  ;;  %v1001_v58 = vrot.slane %v1000_v26, 2  ;;  %2001 = vmatprep.subr.bf16.mxu0 %v2068_v63  ;;  %2014 = vmatpush3.bf16.msra.mxu1 %v2072_v39 }
  0xfc   :  { %v863_v13 = vrot.slane %v862_v40, 1  ;;  %v891_v10 = vrot.slane %v890_v34, 1  ;;  %v919_v0 = vrot.slane %v918_v31, 1  ;;  %v974_v44 = vadd.f32 %v973_v59, %v972_v2  ;;  %2015 = vmatprep.subr.bf16.mxu1 %v2073_v46 }
  0xfd   :  { %v808_v7 = vadd.f32 %v807_v4, %v806_v48  ;;  %v836_v6 = vadd.f32 %v835_v11, %v834_v24  ;;  %v947_v55 = vrot.slane %v946_v33, 1  ;;  %v1002_v9 = vadd.f32 %v1001_v58, %v1000_v26 }
  0xfe   :  { %v864_v36 = vadd.f32 %v863_v13, %v862_v40  ;;  %v892_v32 = vadd.f32 %v891_v10, %v890_v34  ;;  %v920_v27 = vadd.f32 %v919_v0, %v918_v31  ;;  %v975_v37 = vrot.slane %v974_v44, 1  ;;  %2002 = vmatpush3.bf16.msra.mxu0 %v2068_v63 }
  0xff   :  { %v948_v42 = vadd.f32 %v947_v55, %v946_v33  ;;  %v1003_v12 = vrot.slane %v1002_v9, 1  ;;  %v1185_v43 = vsel %vm1108_vm0, %v836_v6, %v808_v7  ;;  %2003 = vmatprep.subr.bf16.mxu0 %v2069_v18  ;;  %2016 = vmatpush3.bf16.msra.mxu1 %v2073_v46  ;;  %v2077_v6 = vld [vmem:[%s3334_s3 + $0x30] sm:$0xff]   ;;  %v2078_v55 = vld [vmem:[%s3334_s3 + $0x38] sm:$0xff]  }
 0x100   :  { %v976_v8 = vadd.f32 %v975_v37, %v974_v44  ;;  %v1186_v57 = vsel %vm1110_vm1, %v864_v36, %v1185_v43  ;;  %2017 = vmatprep.subr.bf16.mxu1 %v2074_v38 }
 0x101   :  { %v1004_v54 = vadd.f32 %v1003_v12, %v1002_v9  ;;  %v1187_v29 = vsel %vm1112_vm2, %v892_v32, %v1186_v57  ;;  %v1898_v9 = vld [vmem:[%s3336_s5] ss:$0 sm:$0xff] }
 0x102   :  { %v1188_v3 = vsel %vm1114_vm3, %v920_v27, %v1187_v29  ;;  %2004 = vmatpush3.bf16.msra.mxu0 %v2069_v18 }
 0x103   :  { %v1189_v56 = vsel %vm1116_vm4, %v948_v42, %v1188_v3  ;;  %2005 = vmatprep.subr.bf16.mxu0 %v2070_v23  ;;  %2018 = vmatpush3.bf16.msra.mxu1 %v2074_v38 }
 0x104   :  { %v1190_v61 = vsel %vm1118_vm5, %v976_v8, %v1189_v56  ;;  %2019 = vmatprep.subr.bf16.mxu1 %v2075_v52 }
 0x105   :  { %v1191_v30 = vsel %vm1120_vm6, %v1004_v54, %v1190_v61 }
 0x106   :  { %v1256_v19 = vpack.c.bf16 %v1191_v30, %v1191_v30  ;;  %2006 = vmatpush3.bf16.msra.mxu0 %v2070_v23 }
 0x107   :  { %2020 = vmatpush3.bf16.msra.mxu1 %v2075_v52 }
 0x108   :  { %1610 = vmatmul.mubr.bf16.gmra.mrb[4].mxu1 %v1256_v19  ;;  %2021 = vmatprep.subr.bf16.mxu1 %v2076_v53 }
 0x10b   :  { %2022 = vmatpush3.bf16.msra.mxu1 %v2076_v53 }
 0x10c   :  { %2023 = vmatprep.subr.bf16.mxu1 %v2077_v6 }
 0x10f   :  { %2024 = vmatpush3.bf16.msra.mxu1 %v2077_v6 }
 0x110   :  { %2025 = vmatprep.subr.bf16.mxu1 %v2078_v55 }
 0x113   :  { %2026 = vmatpush3.bf16.msra.mxu1 %v2078_v55 }
 0x164   :  { %v1931_v14 = vpop.f32.mrb[0].mxu0 }
 0x165   :  { %v1932_v62 = vpop.f32.mrb[1].mxu0 }
 0x166   :  { %v1933_v20 = vadd.f32 %v1932_v62, %v1931_v14  ;;  %v1934_v1 = vpop.f32.mrb[2].mxu0 }
 0x167   :  { %v1935_v22 = vpop.f32.mrb[3].mxu0 }
 0x168   :  { %v1936_v49 = vadd.f32 %v1935_v22, %v1934_v1  ;;  %v1556_v51 = vadd.f32 %v1933_v20, %v1865_v41 }
 0x16a   :  { %v1559_v47 = vadd.f32 %v1936_v49, %v1865_v41 }
 0x18a   :  { %v1959_v35 = vpop.f32.mrb[0].mxu1 }
 0x18b   :  { %v1960_v28 = vpop.f32.mrb[1].mxu1 }
 0x18c   :  { %v1961_v5 = vadd.f32 %v1960_v28, %v1959_v35  ;;  %v1962_v60 = vpop.f32.mrb[2].mxu1 }
 0x18d   :  { %v1963_v15 = vpop.f32.mrb[3].mxu1 }
 0x18e   :  { %v1604_v25 = vadd.f32 %v1961_v5, %v1556_v51  ;;  %v1964_v17 = vadd.f32 %v1963_v15, %v1962_v60 }
 0x190   :  { %v1607_v2 = vadd.f32 %v1964_v17, %v1559_v47  ;;  %v1617_v48 = vmax.f32 %v1604_v25, 0.0 }
 0x192   :  { %v1618_v24 = vmax.f32 %v1607_v2, 0.0 }
 0x194   :  { %v1620_v45 = vpack.c.bf16 %v1618_v24, %v1617_v48 }
 0x196   :  { %2007 = vmatprep.mubr.bf16.mxu0 %v1620_v45 }
 0x1c8   :  { %v1937_v26 = vpop.f32.mrb[4].mxu0 }
 0x1c9   :  { %v1938_v40 = vpop.f32.mrb[5].mxu0 }
 0x1ca   :  { %v1939_v34 = vadd.f32 %v1938_v40, %v1937_v26  ;;  %v1940_v31 = vpop.f32.mrb[6].mxu0 }
 0x1cb   :  { %v1941_v59 = vpop.f32.mrb[7].mxu0 }
 0x1cc   :  { %v1564_v11 = vadd.f32 %v1939_v34, %v1865_v41 }
 0x1db   :  { %v1965_v4 = vpop.f32.mrb[4].mxu1 }
 0x1dc   :  { %v1966_v33 = vpop.f32.mrb[5].mxu1 }
 0x1dd   :  { %v1967_v58 = vadd.f32 %v1966_v33, %v1965_v4  ;;  %v1968_v13 = vpop.f32.mrb[6].mxu1 }
 0x1de   :  { %v1969_v10 = vpop.f32.mrb[7].mxu1 }
 0x1df   :  { %v1612_v0 = vadd.f32 %v1967_v58, %v1564_v11 }
 0x1e1   :  { %v1619_v44 = vmax.f32 %v1612_v0, 0.0 }
 0x1e3   :  { %v1621_v7 = vpack.c.bf16 %v1619_v44, %v1619_v44 }
 0x1e5   :  { %2008 = vmatmul.mubr.bf16.vlgmr.msra.gmra.mrb[8].mxu0 %v1621_v7 }
 0x2b8   :  { %v2009_v36 = vpop.f32.mrb[8].mxu0 }
 0x2b9   :  { %v1736_v32 = vadd.f32 %v2009_v36, %v1898_v9  ;;  %v1727_v27 = vpop.f32.mrb[9].mxu0 }
 0x2ba   :  { %v1728_v37 = vadd.f32 %v1898_v9, %v1727_v27  ;;  %v2010_v42 = vpop.f32.mrb[10].mxu0 }
 0x2bb   :  { %v1730_v12 = vpop.f32.mrb[11].mxu0  ;;  %v1743_v8 = vmax.f32 %v1736_v32, 0.0 }
 0x2bc   :  { %v1731_v43 = vadd.f32 %v1898_v9, %v1730_v12  ;;  %v1741_v57 = vmax.f32 %v1728_v37, 0.0 }
 0x2bd   :  { %v1745_v3 = vpack.c.bf16 %v1743_v8, %v1743_v8 }
 0x2be   :  { %v1742_v54 = vmax.f32 %v1731_v43, 0.0 }
 0x2c0   :  { %v1744_v29 = vpack.c.bf16 %v1742_v54, %v1741_v57 }
 0x2c2   :  { %2027 = vmatprep.mubr.bf16.mxu1 %v1744_v29 }
 0x2c3   :  { %2028 = vmatmul.mubr.bf16.vlgmr.msra.gmra.mrb[8].mxu1 %v1745_v3 }
 0x396   :  { %v2029_v56 = vpop.f32.mrb[8].mxu1 }
 0x397   :  { %1860 = vst [vmem:[%s3337_s6 + $0x10] sm:$0xff] %v2029_v56  ;;  %v1844_v61 = vpop.f32.mrb[9].mxu1 }
 0x398   :  { %1858 = vst [vmem:[%s3337_s6] sm:$0xff] %v1844_v61  ;;  %v2030_v30 = vpop.f32.mrb[10].mxu1 }
 0x399   :  { %v1847_v19 = vpop.f32.mrb[11].mxu1 }
 0x39a   :  { %1859 = vst [vmem:[%s3337_s6 + $0x8] sm:$0xff] %v1847_v19 }

</bundles_post_ra>
